<compile_context>
chip_gen: v6e
topology: v6e:2x2x1
jax: 0.10.0
libtpu: 0.0.40
codegen_flags: <defaults>
</compile_context>

<pallas_src>
import jax
import jax.numpy as jnp
from jax.experimental import pallas as pl
from jax.experimental.pallas import tpu as pltpu

# ----- model constants (consistent with the module structure) -----
T = 10                      # ten board positions fed to the recurrent combiner
DIM = 128                   # DIM
MOVE_EMBED_DIM = 32         # MOVE_EMBED_DIM
NUM_MOVE_BUCKETS = 16       # len(MOVE_BUCKETS)
HID2 = 512                  # fc2 width
BOARD_C, BOARD_H, BOARD_W = 4, 8, 8
BOARD_FLAT = BOARD_C * BOARD_H * BOARD_W        # 256
EMBED_SIZE = 256                                # stand-in "Leela" embed size


def _round_up(x, m):
    return ((x + m - 1) // m) * m


def ensemble_kernel(boards_ref, mask_ref, mv_ref,
                    wembred_ref, bred_ref, wa_ref, wb_ref, bab_ref,
                    start_ref, w1h_ref, w2_ref, b2_ref, w3_ref, b3_ref,
                    out_ref):
    f32, bf16 = jnp.float32, jnp.bfloat16
    TB = mv_ref.shape[0]                            # batch tile (static)

    # --- batched embed + dim-reduce over all T*TB rows in one MXU matmul ---
    # TODO(synk): the real LeelaEmbedder / MaiaEmbedder (pretrained conv
    # residual networks) have no clean Pallas equivalent; a synthetic linear
    # board embedder stands in.  Because it is linear with no bias, the
    # embedder and the dim reducer weight are pre-fused wrapper-side into
    # wembred = wemb @ wred, and the flag gate (emb[~flag] = 0) is applied to
    # the fused matmul result, before the reducer bias -- both exact here.
    x = boards_ref[...].reshape(T * TB, BOARD_FLAT)                      # bf16
    r_pre = jnp.dot(x, wembred_ref[...],
                    preferred_element_type=f32).reshape(T, TB, DIM)
    r_pre = r_pre * mask_ref[...]               # gate positions 2..9 by flags
    r = jnp.maximum(r_pre + bred_ref[...], 0.0)                 # [T, TB, DIM]

    # combiner_b(r_t) with both combiner biases pre-folded (bab = ba + bb):
    # u_t = r_t @ Wb + ba + bb
    u = (jnp.dot(r.reshape(T * TB, DIM).astype(bf16), wb_ref[...],
                 preferred_element_type=f32)
         + bab_ref[...]).reshape(T, TB, DIM)

    # --- short serial recurrence: h_t = tanh(combiner_a(h_{t-1}) + u_t) ---
    # (h_{-1} = learned start vector -> t=0 matches combiner_a(start)).
    # Split the tile into independent row chunks so the 10-step dependency
    # chain of chunk A (MXU matmul) overlaps chunk B's add+tanh (EUP).
    if TB % 32 == 0:
        n_ch = 4
    elif TB % 16 == 0:
        n_ch = 2
    else:
        n_ch = 1
    chunk = TB // n_ch
    hs = [jnp.broadcast_to(start_ref[...], (chunk, DIM)).astype(f32)
          for _ in range(n_ch)]
    for t in range(T):                    # static unroll: 10 steps
        hs = [jnp.tanh(jnp.dot(hs[c].astype(bf16), wa_ref[...],
                               preferred_element_type=f32)
                       + u[t, c * chunk:(c + 1) * chunk])
              for c in range(n_ch)]
    h = hs[0] if n_ch == 1 else jnp.concatenate(hs, axis=0)       # [TB, DIM]

    # Single embedder in the ensemble -> stack(...).mean(0) is identity.
    # dropoutrnn / dropout1 are identity in eval mode.

    # --- head: fc1 (move-embed term + b1 pre-folded into mv), fc2, fc3 ---
    x1 = jnp.maximum(
        jnp.dot(h.astype(bf16), w1h_ref[...], preferred_element_type=f32)
        + mv_ref[...], 0.0)                                        # [TB, DIM]
    x2 = jnp.maximum(
        jnp.dot(x1.astype(bf16), w2_ref[...], preferred_element_type=f32)
        + b2_ref[...], 0.0)                                        # [TB, 512]
    # fc3 (N=1): VPU multiply + XLU lane reduce; lane-thin (TB, 1) output
    # column -> 4 bytes/row of HBM writeback, no broadcast/padded stores.
    y = jnp.sum(x2 * w3_ref[...], axis=-1, keepdims=True) + b3_ref[...]
    out_ref[...] = y                                               # [TB, 1]


def init_params(key):
    ks = jax.random.split(key, 16)

    def lin_w(k, fan_in, shape):
        bound = 1.0 / (fan_in ** 0.5)
        return jax.random.uniform(k, shape, jnp.float32, -bound, bound)

    w1 = lin_w(ks[9], DIM + MOVE_EMBED_DIM, (DIM + MOVE_EMBED_DIM, DIM))
    return dict(
        wemb=lin_w(ks[0], BOARD_FLAT, (BOARD_FLAT, EMBED_SIZE)),
        wred=lin_w(ks[1], EMBED_SIZE, (EMBED_SIZE, DIM)),
        bred=lin_w(ks[2], EMBED_SIZE, (1, DIM)),
        wa=lin_w(ks[3], DIM, (DIM, DIM)),
        ba=lin_w(ks[4], DIM, (1, DIM)),
        wb=lin_w(ks[5], DIM, (DIM, DIM)),
        bb=lin_w(ks[6], DIM, (1, DIM)),
        start=jax.random.uniform(ks[7], (1, DIM), jnp.float32, 0.0, 1.0),
        mtab=jax.random.normal(ks[8], (NUM_MOVE_BUCKETS, MOVE_EMBED_DIM),
                               jnp.float32),
        w1h=w1[:DIM],
        w1m=w1[DIM:],
        b1=lin_w(ks[10], DIM + MOVE_EMBED_DIM, (1, DIM)),
        w2=lin_w(ks[11], DIM, (DIM, HID2)),
        b2=lin_w(ks[12], DIM, (1, HID2)),
        w3=lin_w(ks[13], HID2, (HID2, 1)),
        b3=lin_w(ks[14], HID2, (1, 1)),
    )


def _pick_tile_b(B):
    rb = _round_up(max(B, 1), 8)
    if rb <= 256:
        return rb            # small batch: one tile sized to the batch
    if rb <= 1024:
        return 256           # >=2 tiles -> both v7x TensorCores get work
    return 512               # large batch: amortize the serial recurrence


def ensemble_forward(boards, flags, num_moves, params, tile_b=None):
    """boards: [T, B, C, H, W] f32; flags: [8, B] bool; num_moves: [B] int."""
    B = boards.shape[1]
    f32, bf16 = jnp.float32, jnp.bfloat16

    if tile_b is None:
        tile_b = _pick_tile_b(B)
    padded_B = _round_up(B, tile_b)
    pad = padded_B - B
    num_tiles = padded_B // tile_b

    # Raw bf16 boards stream straight into the kernel; the flag gate is
    # applied in-kernel (no masked f32 copy of the boards tensor in HBM).
    boards_flat = boards.reshape(T, B, BOARD_FLAT).astype(bf16)

    # positions 0 and 1 are always kept; the 8 flags gate positions 2..9.
    mask = jnp.concatenate(
        [jnp.ones((2, B), f32), flags.astype(f32)], axis=0)[:, :, None]

    # fc1(concat([h, mv])) == h @ W1h + (mtab @ W1m)[num_moves] + b1 :
    # gather the precomputed move-embedding contribution (plus b1) here.
    mv_add = (jnp.take(params["mtab"] @ params["w1m"], num_moves, axis=0)
              + params["b1"])                                        # [B, DIM]

    if pad:
        boards_flat = jnp.pad(boards_flat, ((0, 0), (0, pad), (0, 0)))
        mask = jnp.pad(mask, ((0, 0), (0, pad), (0, 0)))
        mv_add = jnp.pad(mv_add, ((0, pad), (0, 0)))

    # TODO(synk): wemb@wred fusion and in-kernel input gating are only exact
    # while the stand-in board embedder is linear with no bias; drop both when
    # the real conv embedders replace it.
    wembred = (params["wemb"] @ params["wred"]).astype(bf16)      # [256, 128]
    bab = params["ba"] + params["bb"]                             # folded bias

    inputs = (boards_flat,                                  # streamed, bf16
              mask,                                         # streamed, f32
              mv_add,                                       # streamed, f32
              wembred,
              params["bred"],
              params["wa"].astype(bf16),
              params["wb"].astype(bf16),
              bab,
              params["start"],
              params["w1h"].astype(bf16),
              params["w2"].astype(bf16),
              params["b2"],
              params["w3"].reshape(1, HID2),   # row form for lane reduce
              params["b3"])

    def resident(shape):                       # weight pinned in VMEM
        return pl.BlockSpec(shape, lambda i: (0,) * len(shape))

    in_specs = [
        pl.BlockSpec((T, tile_b, BOARD_FLAT), lambda i: (0, i, 0)),  # boards
        pl.BlockSpec((T, tile_b, 1), lambda i: (0, i, 0)),           # mask
        pl.BlockSpec((tile_b, DIM), lambda i: (i, 0)),               # mv_add
        resident((BOARD_FLAT, DIM)),
        resident((1, DIM)),
        resident((DIM, DIM)),
        resident((DIM, DIM)),
        resident((1, DIM)),
        resident((1, DIM)),
        resident((DIM, DIM)),
        resident((DIM, HID2)),
        resident((1, HID2)),
        resident((1, HID2)),
        resident((1, 1)),
    ]

    out = pl.pallas_call(
        ensemble_kernel,
        out_shape=jax.ShapeDtypeStruct((padded_B, 1), jnp.float32),
        grid=(num_tiles,),
        in_specs=in_specs,
        out_specs=pl.BlockSpec((tile_b, 1), lambda i: (i, 0)),
        compiler_params=pltpu.CompilerParams(
            dimension_semantics=("parallel",),
            vmem_limit_bytes=48 * 1024 * 1024),
    )(*inputs)
    return out[:B]


if __name__ == "__main__":
    key = jax.random.PRNGKey(0)
    kp, kb, kf, km = jax.random.split(key, 4)
    params = init_params(kp)

    B = 8
    boards = jax.random.normal(kb, (T, B, BOARD_C, BOARD_H, BOARD_W),
                               jnp.float32)
    flags = jax.random.bernoulli(kf, 0.7, (8, B))          # 8 gating flags
    num_moves = jax.random.randint(km, (B,), 0, NUM_MOVE_BUCKETS)

    out = jax.jit(ensemble_forward)(boards, flags, num_moves, params)
    jax.block_until_ready(out)
    assert out.shape == (B, 1) and out.dtype == jnp.float32
    assert bool(jnp.all(jnp.isfinite(out)))
    print("KERNEL_OK")
</pallas_src>

<mosaic_0001>
module attributes {stable_mosaic.version = 11 : i64} {
  func.func @ensemble_kernel(%arg0: i32, %arg1: memref<10x8x256xbf16, #tpu.memory_space<vmem>>, %arg2: memref<10x8x1xf32, #tpu.memory_space<vmem>>, %arg3: memref<8x128xf32, #tpu.memory_space<vmem>>, %arg4: memref<256x128xbf16, #tpu.memory_space<vmem>>, %arg5: memref<1x128xf32, #tpu.memory_space<vmem>>, %arg6: memref<128x128xbf16, #tpu.memory_space<vmem>>, %arg7: memref<128x128xbf16, #tpu.memory_space<vmem>>, %arg8: memref<1x128xf32, #tpu.memory_space<vmem>>, %arg9: memref<1x128xf32, #tpu.memory_space<vmem>>, %arg10: memref<128x128xbf16, #tpu.memory_space<vmem>>, %arg11: memref<128x512xbf16, #tpu.memory_space<vmem>>, %arg12: memref<1x512xf32, #tpu.memory_space<vmem>>, %arg13: memref<1x512xf32, #tpu.memory_space<vmem>>, %arg14: memref<1x1xf32, #tpu.memory_space<vmem>>, %arg15: memref<8x1xf32, #tpu.memory_space<vmem>>) attributes {dimension_semantics = [#tpu.dimension_semantics<parallel>], iteration_bounds = array<i64: 1>, scalar_prefetch = 0 : i64, scratch_operands = 0 : i64, tpu.core_type = #tpu.core_type<tc>, window_params = [{transform_indices = @transform_0, window_bounds = array<i64: 10, 8, 256>}, {transform_indices = @transform_1, window_bounds = array<i64: 10, 8, 1>}, {transform_indices = @transform_2, window_bounds = array<i64: 8, 128>}, {pipeline_mode = #tpu.pipeline_mode<synchronous>, transform_indices = @transform_3, window_bounds = array<i64: 256, 128>}, {pipeline_mode = #tpu.pipeline_mode<synchronous>, transform_indices = @transform_4, window_bounds = array<i64: 1, 128>}, {pipeline_mode = #tpu.pipeline_mode<synchronous>, transform_indices = @transform_5, window_bounds = array<i64: 128, 128>}, {pipeline_mode = #tpu.pipeline_mode<synchronous>, transform_indices = @transform_6, window_bounds = array<i64: 128, 128>}, {pipeline_mode = #tpu.pipeline_mode<synchronous>, transform_indices = @transform_7, window_bounds = array<i64: 1, 128>}, {pipeline_mode = #tpu.pipeline_mode<synchronous>, transform_indices = @transform_8, window_bounds = array<i64: 1, 128>}, {pipeline_mode = #tpu.pipeline_mode<synchronous>, transform_indices = @transform_9, window_bounds = array<i64: 128, 128>}, {pipeline_mode = #tpu.pipeline_mode<synchronous>, transform_indices = @transform_10, window_bounds = array<i64: 128, 512>}, {pipeline_mode = #tpu.pipeline_mode<synchronous>, transform_indices = @transform_11, window_bounds = array<i64: 1, 512>}, {pipeline_mode = #tpu.pipeline_mode<synchronous>, transform_indices = @transform_12, window_bounds = array<i64: 1, 512>}, {pipeline_mode = #tpu.pipeline_mode<synchronous>, transform_indices = @transform_13, window_bounds = array<i64: 1, 1>}, {transform_indices = @transform_14, window_bounds = array<i64: 8, 1>}]} {
    %c0 = arith.constant 0 : index
    %c0_0 = arith.constant 0 : index
    %c0_1 = arith.constant 0 : index
    %0 = vector.load %arg1[%c0, %c0_0, %c0_1] : memref<10x8x256xbf16, #tpu.memory_space<vmem>>, vector<10x8x256xbf16>
    %1 = vector.shape_cast %0 : vector<10x8x256xbf16> to vector<80x256xbf16>
    %c0_2 = arith.constant 0 : index
    %c0_3 = arith.constant 0 : index
    %2 = vector.load %arg4[%c0_2, %c0_3] : memref<256x128xbf16, #tpu.memory_space<vmem>>, vector<256x128xbf16>
    %cst = arith.constant dense<0.000000e+00> : vector<80x128xf32>
    %3 = tpu.matmul %1, %2, %cst {dimension_numbers = #tpu.dot_dimension_numbers<[1], [0], [0], [1], [0, 0, 1, 1], [], []>} : vector<80x256xbf16>, vector<256x128xbf16>, vector<80x128xf32> -> vector<80x128xf32>
    %4 = vector.shape_cast %3 : vector<80x128xf32> to vector<10x8x128xf32>
    %c0_4 = arith.constant 0 : index
    %c0_5 = arith.constant 0 : index
    %c0_6 = arith.constant 0 : index
    %5 = vector.load %arg2[%c0_4, %c0_5, %c0_6] : memref<10x8x1xf32, #tpu.memory_space<vmem>>, vector<10x8x1xf32>
    %6 = vector.broadcast %5 : vector<10x8x1xf32> to vector<10x8x128xf32>
    %7 = arith.mulf %4, %6 : vector<10x8x128xf32>
    %c0_7 = arith.constant 0 : index
    %c0_8 = arith.constant 0 : index
    %8 = vector.load %arg5[%c0_7, %c0_8] : memref<1x128xf32, #tpu.memory_space<vmem>>, vector<1x128xf32>
    %9 = vector.shape_cast %8 : vector<1x128xf32> to vector<1x1x128xf32>
    %10 = vector.broadcast %9 : vector<1x1x128xf32> to vector<10x8x128xf32>
    %11 = arith.addf %7, %10 : vector<10x8x128xf32>
    %cst_9 = arith.constant 0.000000e+00 : f32
    %12 = vector.broadcast %cst_9 : f32 to vector<10x8x128xf32>
    %13 = arith.maximumf %11, %12 : vector<10x8x128xf32>
    %14 = vector.shape_cast %13 : vector<10x8x128xf32> to vector<80x128xf32>
    %15 = arith.truncf %14 : vector<80x128xf32> to vector<80x128xbf16>
    %c0_10 = arith.constant 0 : index
    %c0_11 = arith.constant 0 : index
    %16 = vector.load %arg7[%c0_10, %c0_11] : memref<128x128xbf16, #tpu.memory_space<vmem>>, vector<128x128xbf16>
    %cst_12 = arith.constant dense<0.000000e+00> : vector<80x128xf32>
    %17 = tpu.matmul %15, %16, %cst_12 {dimension_numbers = #tpu.dot_dimension_numbers<[1], [0], [0], [1], [0, 0, 1, 1], [], []>} : vector<80x128xbf16>, vector<128x128xbf16>, vector<80x128xf32> -> vector<80x128xf32>
    %c0_13 = arith.constant 0 : index
    %c0_14 = arith.constant 0 : index
    %18 = vector.load %arg8[%c0_13, %c0_14] : memref<1x128xf32, #tpu.memory_space<vmem>>, vector<1x128xf32>
    %19 = vector.broadcast %18 : vector<1x128xf32> to vector<80x128xf32>
    %20 = arith.addf %17, %19 : vector<80x128xf32>
    %21 = vector.shape_cast %20 : vector<80x128xf32> to vector<10x8x128xf32>
    %c0_15 = arith.constant 0 : index
    %c0_16 = arith.constant 0 : index
    %22 = vector.load %arg9[%c0_15, %c0_16] : memref<1x128xf32, #tpu.memory_space<vmem>>, vector<1x128xf32>
    %23 = vector.shape_cast %22 : vector<1x128xf32> to vector<1x128xf32>
    %24 = vector.broadcast %23 : vector<1x128xf32> to vector<8x128xf32>
    %25 = arith.truncf %24 : vector<8x128xf32> to vector<8x128xbf16>
    %c0_17 = arith.constant 0 : index
    %c0_18 = arith.constant 0 : index
    %26 = vector.load %arg6[%c0_17, %c0_18] : memref<128x128xbf16, #tpu.memory_space<vmem>>, vector<128x128xbf16>
    %cst_19 = arith.constant dense<0.000000e+00> : vector<8x128xf32>
    %27 = tpu.matmul %25, %26, %cst_19 {dimension_numbers = #tpu.dot_dimension_numbers<[1], [0], [0], [1], [0, 0, 1, 1], [], []>} : vector<8x128xbf16>, vector<128x128xbf16>, vector<8x128xf32> -> vector<8x128xf32>
    %28 = vector.extract_strided_slice %21 {offsets = [0, 0, 0], sizes = [1, 8, 128], strides = [1, 1, 1]} : vector<10x8x128xf32> to vector<1x8x128xf32>
    %29 = vector.shape_cast %28 : vector<1x8x128xf32> to vector<8x128xf32>
    %30 = arith.addf %27, %29 : vector<8x128xf32>
    %31 = math.tanh %30 : vector<8x128xf32>
    %32 = arith.truncf %31 : vector<8x128xf32> to vector<8x128xbf16>
    %c0_20 = arith.constant 0 : index
    %c0_21 = arith.constant 0 : index
    %33 = vector.load %arg6[%c0_20, %c0_21] : memref<128x128xbf16, #tpu.memory_space<vmem>>, vector<128x128xbf16>
    %cst_22 = arith.constant dense<0.000000e+00> : vector<8x128xf32>
    %34 = tpu.matmul %32, %33, %cst_22 {dimension_numbers = #tpu.dot_dimension_numbers<[1], [0], [0], [1], [0, 0, 1, 1], [], []>} : vector<8x128xbf16>, vector<128x128xbf16>, vector<8x128xf32> -> vector<8x128xf32>
    %35 = vector.extract_strided_slice %21 {offsets = [1, 0, 0], sizes = [1, 8, 128], strides = [1, 1, 1]} : vector<10x8x128xf32> to vector<1x8x128xf32>
    %36 = vector.shape_cast %35 : vector<1x8x128xf32> to vector<8x128xf32>
    %37 = arith.addf %34, %36 : vector<8x128xf32>
    %38 = math.tanh %37 : vector<8x128xf32>
    %39 = arith.truncf %38 : vector<8x128xf32> to vector<8x128xbf16>
    %c0_23 = arith.constant 0 : index
    %c0_24 = arith.constant 0 : index
    %40 = vector.load %arg6[%c0_23, %c0_24] : memref<128x128xbf16, #tpu.memory_space<vmem>>, vector<128x128xbf16>
    %cst_25 = arith.constant dense<0.000000e+00> : vector<8x128xf32>
    %41 = tpu.matmul %39, %40, %cst_25 {dimension_numbers = #tpu.dot_dimension_numbers<[1], [0], [0], [1], [0, 0, 1, 1], [], []>} : vector<8x128xbf16>, vector<128x128xbf16>, vector<8x128xf32> -> vector<8x128xf32>
    %42 = vector.extract_strided_slice %21 {offsets = [2, 0, 0], sizes = [1, 8, 128], strides = [1, 1, 1]} : vector<10x8x128xf32> to vector<1x8x128xf32>
    %43 = vector.shape_cast %42 : vector<1x8x128xf32> to vector<8x128xf32>
    %44 = arith.addf %41, %43 : vector<8x128xf32>
    %45 = math.tanh %44 : vector<8x128xf32>
    %46 = arith.truncf %45 : vector<8x128xf32> to vector<8x128xbf16>
    %c0_26 = arith.constant 0 : index
    %c0_27 = arith.constant 0 : index
    %47 = vector.load %arg6[%c0_26, %c0_27] : memref<128x128xbf16, #tpu.memory_space<vmem>>, vector<128x128xbf16>
    %cst_28 = arith.constant dense<0.000000e+00> : vector<8x128xf32>
    %48 = tpu.matmul %46, %47, %cst_28 {dimension_numbers = #tpu.dot_dimension_numbers<[1], [0], [0], [1], [0, 0, 1, 1], [], []>} : vector<8x128xbf16>, vector<128x128xbf16>, vector<8x128xf32> -> vector<8x128xf32>
    %49 = vector.extract_strided_slice %21 {offsets = [3, 0, 0], sizes = [1, 8, 128], strides = [1, 1, 1]} : vector<10x8x128xf32> to vector<1x8x128xf32>
    %50 = vector.shape_cast %49 : vector<1x8x128xf32> to vector<8x128xf32>
    %51 = arith.addf %48, %50 : vector<8x128xf32>
    %52 = math.tanh %51 : vector<8x128xf32>
    %53 = arith.truncf %52 : vector<8x128xf32> to vector<8x128xbf16>
    %c0_29 = arith.constant 0 : index
    %c0_30 = arith.constant 0 : index
    %54 = vector.load %arg6[%c0_29, %c0_30] : memref<128x128xbf16, #tpu.memory_space<vmem>>, vector<128x128xbf16>
    %cst_31 = arith.constant dense<0.000000e+00> : vector<8x128xf32>
    %55 = tpu.matmul %53, %54, %cst_31 {dimension_numbers = #tpu.dot_dimension_numbers<[1], [0], [0], [1], [0, 0, 1, 1], [], []>} : vector<8x128xbf16>, vector<128x128xbf16>, vector<8x128xf32> -> vector<8x128xf32>
    %56 = vector.extract_strided_slice %21 {offsets = [4, 0, 0], sizes = [1, 8, 128], strides = [1, 1, 1]} : vector<10x8x128xf32> to vector<1x8x128xf32>
    %57 = vector.shape_cast %56 : vector<1x8x128xf32> to vector<8x128xf32>
    %58 = arith.addf %55, %57 : vector<8x128xf32>
    %59 = math.tanh %58 : vector<8x128xf32>
    %60 = arith.truncf %59 : vector<8x128xf32> to vector<8x128xbf16>
    %c0_32 = arith.constant 0 : index
    %c0_33 = arith.constant 0 : index
    %61 = vector.load %arg6[%c0_32, %c0_33] : memref<128x128xbf16, #tpu.memory_space<vmem>>, vector<128x128xbf16>
    %cst_34 = arith.constant dense<0.000000e+00> : vector<8x128xf32>
    %62 = tpu.matmul %60, %61, %cst_34 {dimension_numbers = #tpu.dot_dimension_numbers<[1], [0], [0], [1], [0, 0, 1, 1], [], []>} : vector<8x128xbf16>, vector<128x128xbf16>, vector<8x128xf32> -> vector<8x128xf32>
    %63 = vector.extract_strided_slice %21 {offsets = [5, 0, 0], sizes = [1, 8, 128], strides = [1, 1, 1]} : vector<10x8x128xf32> to vector<1x8x128xf32>
    %64 = vector.shape_cast %63 : vector<1x8x128xf32> to vector<8x128xf32>
    %65 = arith.addf %62, %64 : vector<8x128xf32>
    %66 = math.tanh %65 : vector<8x128xf32>
    %67 = arith.truncf %66 : vector<8x128xf32> to vector<8x128xbf16>
    %c0_35 = arith.constant 0 : index
    %c0_36 = arith.constant 0 : index
    %68 = vector.load %arg6[%c0_35, %c0_36] : memref<128x128xbf16, #tpu.memory_space<vmem>>, vector<128x128xbf16>
    %cst_37 = arith.constant dense<0.000000e+00> : vector<8x128xf32>
    %69 = tpu.matmul %67, %68, %cst_37 {dimension_numbers = #tpu.dot_dimension_numbers<[1], [0], [0], [1], [0, 0, 1, 1], [], []>} : vector<8x128xbf16>, vector<128x128xbf16>, vector<8x128xf32> -> vector<8x128xf32>
    %70 = vector.extract_strided_slice %21 {offsets = [6, 0, 0], sizes = [1, 8, 128], strides = [1, 1, 1]} : vector<10x8x128xf32> to vector<1x8x128xf32>
    %71 = vector.shape_cast %70 : vector<1x8x128xf32> to vector<8x128xf32>
    %72 = arith.addf %69, %71 : vector<8x128xf32>
    %73 = math.tanh %72 : vector<8x128xf32>
    %74 = arith.truncf %73 : vector<8x128xf32> to vector<8x128xbf16>
    %c0_38 = arith.constant 0 : index
    %c0_39 = arith.constant 0 : index
    %75 = vector.load %arg6[%c0_38, %c0_39] : memref<128x128xbf16, #tpu.memory_space<vmem>>, vector<128x128xbf16>
    %cst_40 = arith.constant dense<0.000000e+00> : vector<8x128xf32>
    %76 = tpu.matmul %74, %75, %cst_40 {dimension_numbers = #tpu.dot_dimension_numbers<[1], [0], [0], [1], [0, 0, 1, 1], [], []>} : vector<8x128xbf16>, vector<128x128xbf16>, vector<8x128xf32> -> vector<8x128xf32>
    %77 = vector.extract_strided_slice %21 {offsets = [7, 0, 0], sizes = [1, 8, 128], strides = [1, 1, 1]} : vector<10x8x128xf32> to vector<1x8x128xf32>
    %78 = vector.shape_cast %77 : vector<1x8x128xf32> to vector<8x128xf32>
    %79 = arith.addf %76, %78 : vector<8x128xf32>
    %80 = math.tanh %79 : vector<8x128xf32>
    %81 = arith.truncf %80 : vector<8x128xf32> to vector<8x128xbf16>
    %c0_41 = arith.constant 0 : index
    %c0_42 = arith.constant 0 : index
    %82 = vector.load %arg6[%c0_41, %c0_42] : memref<128x128xbf16, #tpu.memory_space<vmem>>, vector<128x128xbf16>
    %cst_43 = arith.constant dense<0.000000e+00> : vector<8x128xf32>
    %83 = tpu.matmul %81, %82, %cst_43 {dimension_numbers = #tpu.dot_dimension_numbers<[1], [0], [0], [1], [0, 0, 1, 1], [], []>} : vector<8x128xbf16>, vector<128x128xbf16>, vector<8x128xf32> -> vector<8x128xf32>
    %84 = vector.extract_strided_slice %21 {offsets = [8, 0, 0], sizes = [1, 8, 128], strides = [1, 1, 1]} : vector<10x8x128xf32> to vector<1x8x128xf32>
    %85 = vector.shape_cast %84 : vector<1x8x128xf32> to vector<8x128xf32>
    %86 = arith.addf %83, %85 : vector<8x128xf32>
    %87 = math.tanh %86 : vector<8x128xf32>
    %88 = arith.truncf %87 : vector<8x128xf32> to vector<8x128xbf16>
    %c0_44 = arith.constant 0 : index
    %c0_45 = arith.constant 0 : index
    %89 = vector.load %arg6[%c0_44, %c0_45] : memref<128x128xbf16, #tpu.memory_space<vmem>>, vector<128x128xbf16>
    %cst_46 = arith.constant dense<0.000000e+00> : vector<8x128xf32>
    %90 = tpu.matmul %88, %89, %cst_46 {dimension_numbers = #tpu.dot_dimension_numbers<[1], [0], [0], [1], [0, 0, 1, 1], [], []>} : vector<8x128xbf16>, vector<128x128xbf16>, vector<8x128xf32> -> vector<8x128xf32>
    %91 = vector.extract_strided_slice %21 {offsets = [9, 0, 0], sizes = [1, 8, 128], strides = [1, 1, 1]} : vector<10x8x128xf32> to vector<1x8x128xf32>
    %92 = vector.shape_cast %91 : vector<1x8x128xf32> to vector<8x128xf32>
    %93 = arith.addf %90, %92 : vector<8x128xf32>
    %94 = math.tanh %93 : vector<8x128xf32>
    %95 = arith.truncf %94 : vector<8x128xf32> to vector<8x128xbf16>
    %c0_47 = arith.constant 0 : index
    %c0_48 = arith.constant 0 : index
    %96 = vector.load %arg10[%c0_47, %c0_48] : memref<128x128xbf16, #tpu.memory_space<vmem>>, vector<128x128xbf16>
    %cst_49 = arith.constant dense<0.000000e+00> : vector<8x128xf32>
    %97 = tpu.matmul %95, %96, %cst_49 {dimension_numbers = #tpu.dot_dimension_numbers<[1], [0], [0], [1], [0, 0, 1, 1], [], []>} : vector<8x128xbf16>, vector<128x128xbf16>, vector<8x128xf32> -> vector<8x128xf32>
    %c0_50 = arith.constant 0 : index
    %c0_51 = arith.constant 0 : index
    %98 = vector.load %arg3[%c0_50, %c0_51] : memref<8x128xf32, #tpu.memory_space<vmem>>, vector<8x128xf32>
    %99 = arith.addf %97, %98 : vector<8x128xf32>
    %cst_52 = arith.constant 0.000000e+00 : f32
    %100 = vector.broadcast %cst_52 : f32 to vector<8x128xf32>
    %101 = arith.maximumf %99, %100 : vector<8x128xf32>
    %102 = arith.truncf %101 : vector<8x128xf32> to vector<8x128xbf16>
    %c0_53 = arith.constant 0 : index
    %c0_54 = arith.constant 0 : index
    %103 = vector.load %arg11[%c0_53, %c0_54] : memref<128x512xbf16, #tpu.memory_space<vmem>>, vector<128x512xbf16>
    %cst_55 = arith.constant dense<0.000000e+00> : vector<8x512xf32>
    %104 = tpu.matmul %102, %103, %cst_55 {dimension_numbers = #tpu.dot_dimension_numbers<[1], [0], [0], [1], [0, 0, 1, 1], [], []>} : vector<8x128xbf16>, vector<128x512xbf16>, vector<8x512xf32> -> vector<8x512xf32>
    %c0_56 = arith.constant 0 : index
    %c0_57 = arith.constant 0 : index
    %105 = vector.load %arg12[%c0_56, %c0_57] : memref<1x512xf32, #tpu.memory_space<vmem>>, vector<1x512xf32>
    %106 = vector.broadcast %105 : vector<1x512xf32> to vector<8x512xf32>
    %107 = arith.addf %104, %106 : vector<8x512xf32>
    %cst_58 = arith.constant 0.000000e+00 : f32
    %108 = vector.broadcast %cst_58 : f32 to vector<8x512xf32>
    %109 = arith.maximumf %107, %108 : vector<8x512xf32>
    %c0_59 = arith.constant 0 : index
    %c0_60 = arith.constant 0 : index
    %110 = vector.load %arg13[%c0_59, %c0_60] : memref<1x512xf32, #tpu.memory_space<vmem>>, vector<1x512xf32>
    %111 = vector.broadcast %110 : vector<1x512xf32> to vector<8x512xf32>
    %112 = arith.mulf %109, %111 : vector<8x512xf32>
    %cst_61 = arith.constant dense<0.000000e+00> : vector<8xf32>
    %113 = vector.multi_reduction <add>, %112, %cst_61 [1] : vector<8x512xf32> to vector<8xf32>
    %114 = vector.shape_cast %113 : vector<8xf32> to vector<8x1xf32>
    %c0_62 = arith.constant 0 : index
    %c0_63 = arith.constant 0 : index
    %115 = vector.load %arg14[%c0_62, %c0_63] : memref<1x1xf32, #tpu.memory_space<vmem>>, vector<1x1xf32>
    %116 = vector.broadcast %115 : vector<1x1xf32> to vector<8x1xf32>
    %117 = arith.addf %114, %116 : vector<8x1xf32>
    %c0_64 = arith.constant 0 : index
    %c0_65 = arith.constant 0 : index
    %118 = vector.load %arg15[%c0_64, %c0_65] : memref<8x1xf32, #tpu.memory_space<vmem>>, vector<8x1xf32>
    tpu.vector_store %arg15[%c0_64, %c0_65], %117 {strides = array<i32>} : memref<8x1xf32, #tpu.memory_space<vmem>>, vector<8x1xf32>,
    return
  }
  func.func @transform_0(%arg0: i32) -> (i32, i32, i32) {
    %c0_i32 = arith.constant 0 : i32
    %c0_i32_0 = arith.constant 0 : i32
    %c0_i32_1 = arith.constant 0 : i32
    return %c0_i32, %arg0, %c0_i32_0 : i32, i32, i32
  }
  func.func @transform_1(%arg0: i32) -> (i32, i32, i32) {
    %c0_i32 = arith.constant 0 : i32
    %c0_i32_0 = arith.constant 0 : i32
    %c0_i32_1 = arith.constant 0 : i32
    return %c0_i32, %arg0, %c0_i32_0 : i32, i32, i32
  }
  func.func @transform_2(%arg0: i32) -> (i32, i32) {
    %c0_i32 = arith.constant 0 : i32
    %c0_i32_0 = arith.constant 0 : i32
    return %arg0, %c0_i32 : i32, i32
  }
  func.func @transform_3(%arg0: i32) -> (i32, i32) {
    %c0_i32 = arith.constant 0 : i32
    %c0_i32_0 = arith.constant 0 : i32
    %c0_i32_1 = arith.constant 0 : i32
    return %c0_i32, %c0_i32_0 : i32, i32
  }
  func.func @transform_4(%arg0: i32) -> (i32, i32) {
    %c0_i32 = arith.constant 0 : i32
    %c0_i32_0 = arith.constant 0 : i32
    %c0_i32_1 = arith.constant 0 : i32
    return %c0_i32, %c0_i32_0 : i32, i32
  }
  func.func @transform_5(%arg0: i32) -> (i32, i32) {
    %c0_i32 = arith.constant 0 : i32
    %c0_i32_0 = arith.constant 0 : i32
    %c0_i32_1 = arith.constant 0 : i32
    return %c0_i32, %c0_i32_0 : i32, i32
  }
  func.func @transform_6(%arg0: i32) -> (i32, i32) {
    %c0_i32 = arith.constant 0 : i32
    %c0_i32_0 = arith.constant 0 : i32
    %c0_i32_1 = arith.constant 0 : i32
    return %c0_i32, %c0_i32_0 : i32, i32
  }
  func.func @transform_7(%arg0: i32) -> (i32, i32) {
    %c0_i32 = arith.constant 0 : i32
    %c0_i32_0 = arith.constant 0 : i32
    %c0_i32_1 = arith.constant 0 : i32
    return %c0_i32, %c0_i32_0 : i32, i32
  }
  func.func @transform_8(%arg0: i32) -> (i32, i32) {
    %c0_i32 = arith.constant 0 : i32
    %c0_i32_0 = arith.constant 0 : i32
    %c0_i32_1 = arith.constant 0 : i32
    return %c0_i32, %c0_i32_0 : i32, i32
  }
  func.func @transform_9(%arg0: i32) -> (i32, i32) {
    %c0_i32 = arith.constant 0 : i32
    %c0_i32_0 = arith.constant 0 : i32
    %c0_i32_1 = arith.constant 0 : i32
    return %c0_i32, %c0_i32_0 : i32, i32
  }
  func.func @transform_10(%arg0: i32) -> (i32, i32) {
    %c0_i32 = arith.constant 0 : i32
    %c0_i32_0 = arith.constant 0 : i32
    %c0_i32_1 = arith.constant 0 : i32
    return %c0_i32, %c0_i32_0 : i32, i32
  }
  func.func @transform_11(%arg0: i32) -> (i32, i32) {
    %c0_i32 = arith.constant 0 : i32
    %c0_i32_0 = arith.constant 0 : i32
    %c0_i32_1 = arith.constant 0 : i32
    return %c0_i32, %c0_i32_0 : i32, i32
  }
  func.func @transform_12(%arg0: i32) -> (i32, i32) {
    %c0_i32 = arith.constant 0 : i32
    %c0_i32_0 = arith.constant 0 : i32
    %c0_i32_1 = arith.constant 0 : i32
    return %c0_i32, %c0_i32_0 : i32, i32
  }
  func.func @transform_13(%arg0: i32) -> (i32, i32) {
    %c0_i32 = arith.constant 0 : i32
    %c0_i32_0 = arith.constant 0 : i32
    %c0_i32_1 = arith.constant 0 : i32
    return %c0_i32, %c0_i32_0 : i32, i32
  }
  func.func @transform_14(%arg0: i32) -> (i32, i32) {
    %c0_i32 = arith.constant 0 : i32
    %c0_i32_0 = arith.constant 0 : i32
    return %arg0, %c0_i32 : i32, i32
  }
}

</mosaic_0001>

<bundles_post_ra>
// kernel: ensemble_forward.1
= control target key start
LH: loop header
LB: loop body
LE: loop exit
PB: predicated region body
PF: predicated region fallthrough
CT: control target
= control target key end

     0   :  { %v2129_v1 = vmov 0   ;;  %v2130_v3 = vmov 0.0   ;;  %vm2131_vm0 = vmmov 0   ;;  %vm1495_vm1 = vcmask 7168   ;;  %s2771_s3 = inlined_call_operand.vmem [shape: bf16[256,128], index: 3, kind: input, shape index: {}]   ;;  %s2772_s0 = inlined_call_operand.vmem [shape: bf16[10,8,256], index: 0, kind: input, shape index: {}]   ;;  %s2773_s1 = inlined_call_operand.vmem [shape: f32[10,8,1], index: 1, kind: input, shape index: {}]   ;;  %s2774_s5 = inlined_call_operand.vmem [shape: bf16[128,128], index: 5, kind: input, shape index: {}]   ;;  %s2775_s6 = inlined_call_operand.vmem [shape: bf16[128,128], index: 6, kind: input, shape index: {}]   ;;  %s2776_s8 = inlined_call_operand.vmem [shape: f32[1,128], index: 8, kind: input, shape index: {}]   ;;  %s2777_s4 = inlined_call_operand.vmem [shape: f32[1,128], index: 4, kind: input, shape index: {}]   ;;  %s2778_s7 = inlined_call_operand.vmem [shape: f32[1,128], index: 7, kind: input, shape index: {}]   ;;  %s2779_s9 = inlined_call_operand.vmem [shape: bf16[128,128], index: 9, kind: input, shape index: {}]   ;;  %s2780_s10 = inlined_call_operand.vmem [shape: bf16[128,512], index: 10, kind: input, shape index: {}]   ;;  %s2781_s2 = inlined_call_operand.vmem [shape: f32[8,128], index: 2, kind: input, shape index: {}]   ;;  %s2782_s13 = inlined_call_operand.<no memory space> [shape: f32[1,1], index: 13, kind: input, shape index: {}]   ;;  %s2783_s11 = inlined_call_operand.vmem [shape: f32[1,512], index: 11, kind: input, shape index: {}]   ;;  %s2784_s12 = inlined_call_operand.vmem [shape: f32[1,512], index: 12, kind: input, shape index: {}]   ;;  %s2785_s14 = inlined_call_operand.vmem [shape: f32[8,1], index: 14, kind: output, shape index: {}]  }
   0x1   :  { %v2006_v0 = vld [vmem:[%s2771_s3 + $0x78] sm:$0xff]   ;;  %2004 = vset.pattern.permute.xlu0 %v2129_v1  ;;  %2005 = vset.pattern.permute.xlu1 %v2129_v1  ;;  %v2008_v4 = vld [vmem:[%s2771_s3 + $0x70] sm:$0xff]   ;;  %v2010_v6 = vld [vmem:[%s2771_s3 + $0x68] sm:$0xff]  }
   0x2   :  { %v2007_v2 = vld [vmem:[%s2771_s3 + $0x38] sm:$0xff]   ;;  %1745 = vmatprep.subr.bf16.mxu1 %v2130_v3  ;;  %1587 = vmatprep.subr.bf16.mxu0 %v2006_v0  ;;  %v2009_v5 = vld [vmem:[%s2771_s3 + $0x30] sm:$0xff]   ;;  %v2011_v7 = vld [vmem:[%s2771_s3 + $0x28] sm:$0xff]  }
   0x3   :  { %1588 = vmatpush3.bf16.msra.mxu0 %v2007_v2  ;;  %v2012_v8 = vld [vmem:[%s2771_s3 + $0x60] sm:$0xff]   ;;  %v2014_v10 = vld [vmem:[%s2771_s3 + $0x58] sm:$0xff]   ;;  %v2016_v12 = vld [vmem:[%s2771_s3 + $0x50] sm:$0xff]   ;;  %1761 = vmatprep.mubr.msk.bf16.mxu1 %vm2131_vm0, %v2130_v3 }
   0x4   :  { %1589 = vmatprep.subr.bf16.mxu0 %v2008_v4  ;;  %v2013_v9 = vld [vmem:[%s2771_s3 + $0x20] sm:$0xff]   ;;  %v2015_v11 = vld [vmem:[%s2771_s3 + $0x18] sm:$0xff]   ;;  %v2017_v14 = vld [vmem:[%s2771_s3 + $0x10] sm:$0xff]  }
   0x5   :  { %v2024_v13 = vld [vmem:[%s2772_s0 + $0x4] ss:$8 sps:$4 sm:$0xff]   ;;  %v313_v20 = vld [vmem:[%s2773_s1 + $0x10] sm:$0xff]  ;;  %v314_v22 = vld [vmem:[%s2773_s1 + $0x18] sm:$0xff] }
   0x6   :  { %270 = vmatprep.mubr.bf16.mxu0 %v2024_v13  ;;  %v2018_v15 = vld [vmem:[%s2771_s3 + $0x48] sm:$0xff]   ;;  %v311_v16 = vld [vmem:[%s2773_s1] sm:$0xff]  ;;  %333 = vperm.xlu1 %2005, %v313_v20   ;;  %v2039_v25 = vld [vmem:[%s2775_s6 + $0x38] sm:$0xff]  }
   0x7   :  { %1590 = vmatpush3.bf16.msra.mxu0 %v2009_v5  ;;  %v2019_v17 = vld [vmem:[%s2771_s3 + $0x8] sm:$0xff]   ;;  %323 = vperm.xlu0 %2004, %v311_v16   ;;  %v2020_v18 = vld [vmem:[%s2771_s3 + $0x40] sm:$0xff]   ;;  %v2025_v26 = vld [vmem:[%s2772_s0 + $0x14] ss:$8 sps:$4 sm:$0xff]  }
   0x8   :  { %1591 = vmatprep.subr.bf16.mxu0 %v2010_v6  ;;  %v312_v19 = vld [vmem:[%s2773_s1 + $0x8] sm:$0xff]  ;;  %v2021_v21 = vld [vmem:[%s2771_s3] sm:$0xff]   ;;  %1746 = vmatpush3.bf16.msra.mxu1 %v2039_v25  ;;  %v2041_v28 = vld [vmem:[%s2775_s6 + $0x30] sm:$0xff]  }
   0x9   :  { %v315_v23 = vld [vmem:[%s2773_s1 + $0x20] sm:$0xff]  ;;  %v316_v27 = vld [vmem:[%s2773_s1 + $0x28] sm:$0xff]  ;;  %v317_v29 = vld [vmem:[%s2773_s1 + $0x30] sm:$0xff]  ;;  %1747 = vmatprep.subr.bf16.mxu1 %v2130_v3 }
   0xa   :  { %v2022_v24 = vld [vmem:[%s2772_s0] ss:$8 sps:$4 sm:$0xff]   ;;  %338 = vperm.xlu1 %2005, %v314_v22   ;;  %v2298_v30 = vld [vmem:[%s2774_s5 + $0x38] sm:$0xff]   ;;  %v2310_v33 = vld [vmem:[%s2774_s5 + $0x30] sm:$0xff]  }
   0xb   :  { %1592 = vmatpush3.bf16.msra.mxu0 %v2011_v7  ;;  %328 = vperm.xlu0 %2004, %v312_v19   ;;  %v318_v31 = vld [vmem:[%s2773_s1 + $0x38] sm:$0xff]  ;;  %v319_v32 = vld [vmem:[%s2773_s1 + $0x40] sm:$0xff]  ;;  %v2042_v34 = vld [vmem:[%s2775_s6 + $0x28] sm:$0xff]  }
   0xc   :  { %1593 = vmatprep.subr.bf16.mxu0 %v2012_v8  ;;  %1748 = vmatpush3.bf16.msra.mxu1 %v2041_v28  ;;  %v2027_v35 = vld [vmem:[%s2772_s0 + $0x10] ss:$8 sps:$4 sm:$0xff]   ;;  %v320_v36 = vld [vmem:[%s2773_s1 + $0x48] sm:$0xff]  ;;  %v2044_v37 = vld [vmem:[%s2775_s6 + $0x20] sm:$0xff]  }
   0xd   :  { %1749 = vmatprep.subr.bf16.mxu1 %v2130_v3  ;;  %v2028_v38 = vld [vmem:[%s2772_s0 + $0x24] ss:$8 sps:$4 sm:$0xff]   ;;  %v2030_v41 = vld [vmem:[%s2772_s0 + $0x20] ss:$8 sps:$4 sm:$0xff]   ;;  %v2031_v42 = vld [vmem:[%s2772_s0 + $0x34] ss:$8 sps:$4 sm:$0xff]  }
   0xe   :  { %348 = vperm.xlu1 %2005, %v316_v27   ;;  %v2335_v39 = vld [vmem:[%s2774_s5 + $0x28] sm:$0xff]   ;;  %v2343_v40 = vld [vmem:[%s2774_s5 + $0x20] sm:$0xff]   ;;  %v2356_v43 = vld [vmem:[%s2774_s5 + $0x18] sm:$0xff]  }
   0xf   :  { %1594 = vmatpush3.bf16.msra.mxu0 %v2013_v9  ;;  %343 = vperm.xlu0 %2004, %v315_v23   ;;  %v2033_v44 = vld [vmem:[%s2772_s0 + $0x30] ss:$8 sps:$4 sm:$0xff]   ;;  %v2034_v45 = vld [vmem:[%s2772_s0 + $0x44] ss:$8 sps:$4 sm:$0xff]   ;;  %v2036_v46 = vld [vmem:[%s2772_s0 + $0x40] ss:$8 sps:$4 sm:$0xff]  }
  0x10   :  { %1595 = vmatprep.subr.bf16.mxu0 %v2014_v10  ;;  %1750 = vmatpush3.bf16.msra.mxu1 %v2042_v34  ;;  %v2046_v47 = vld [vmem:[%s2775_s6 + $0x18] sm:$0xff]   ;;  %v2376_v48 = vld [vmem:[%s2774_s5 + $0x10] sm:$0xff]   ;;  %v2387_v50 = vld [vmem:[%s2774_s5 + $0x8] sm:$0xff]  }
  0x11   :  { %1751 = vmatprep.subr.bf16.mxu1 %v2130_v3  ;;  %v2048_v49 = vld [vmem:[%s2775_s6 + $0x10] sm:$0xff]   ;;  %v2050_v51 = vld [vmem:[%s2775_s6 + $0x8] sm:$0xff]   ;;  %v2398_v52 = vld [vmem:[%s2774_s5] sm:$0xff]  }
  0x12   :  { %358 = vperm.xlu1 %2005, %v318_v31   ;;  %v1537_v53 = vld [vmem:[%s2776_s8] ss:$0 sm:$0xff] }
  0x13   :  { %1596 = vmatpush3.bf16.msra.mxu0 %v2015_v11  ;;  %353 = vperm.xlu0 %2004, %v317_v29   ;;  %v564_v54 = vpack.c.bf16 %v1537_v53, %v1537_v53  ;;  %v2052_v55 = vld [vmem:[%s2775_s6] sm:$0xff]  }
  0x14   :  { %1597 = vmatprep.subr.bf16.mxu0 %v2016_v12  ;;  %1752 = vmatpush3.bf16.msra.mxu1 %v2044_v37  ;;  %v2435_v62 = vld [vmem:[%s2777_s4] ss:$0 sm:$0xff] }
  0x15   :  { %1753 = vmatprep.subr.bf16.mxu1 %v2130_v3 }
  0x16   :  { %368 = vperm.xlu1 %2005, %v320_v36  }
  0x17   :  { %1598 = vmatpush3.bf16.msra.mxu0 %v2017_v14  ;;  %363 = vperm.xlu0 %2004, %v319_v32  }
  0x18   :  { %1599 = vmatprep.subr.bf16.mxu0 %v2018_v15  ;;  %1754 = vmatpush3.bf16.msra.mxu1 %v2046_v47 }
  0x19   :  { %1755 = vmatprep.subr.bf16.mxu1 %v2130_v3 }
  0x1b   :  { %1600 = vmatpush3.bf16.msra.mxu0 %v2019_v17 }
  0x1c   :  { %1601 = vmatprep.subr.bf16.mxu0 %v2020_v18  ;;  %1756 = vmatpush3.bf16.msra.mxu1 %v2048_v49 }
  0x1d   :  { %1757 = vmatprep.subr.bf16.mxu1 %v2130_v3 }
  0x1f   :  { %1602 = vmatpush3.bf16.msra.mxu0 %v2021_v21 }
  0x20   :  { %1781 = vmatprep.subr.bf16.mxu0 %v2130_v3  ;;  %1758 = vmatpush3.bf16.msra.mxu1 %v2050_v51 }
  0x21   :  { %1759 = vmatprep.subr.bf16.mxu1 %v2130_v3 }
  0x22   :  { %271 = vmatmul.mubr.bf16.vlgmr.msra.gmra.mxu0 %v2022_v24 }
  0x23   :  { %278 = vmatprep.mubr.bf16.mxu0 %v2025_v26  ;;  %1782 = vmatpush3.bf16.msra.mxu0 %v2298_v30 }
  0x24   :  { %1783 = vmatprep.subr.bf16.mxu0 %v2130_v3  ;;  %1760 = vmatpush3.bf16.msra.mxu1 %v2052_v55 }
  0x25   :  { %1801 = vmatprep.subr.bf16.mxu1 %v2130_v3 }
  0x27   :  { %1784 = vmatpush3.bf16.msra.mxu0 %v2310_v33 }
  0x28   :  { %1785 = vmatprep.subr.bf16.mxu0 %v2130_v3 }
  0x2a   :  { %279 = vmatmul.mubr.bf16.gmra.mxu0 %v2027_v35 }
  0x2b   :  { %286 = vmatprep.mubr.bf16.mxu0 %v2028_v38  ;;  %1786 = vmatpush3.bf16.msra.mxu0 %v2335_v39 }
  0x2c   :  { %1787 = vmatprep.subr.bf16.mxu0 %v2130_v3 }
  0x2f   :  { %1788 = vmatpush3.bf16.msra.mxu0 %v2343_v40 }
  0x30   :  { %1789 = vmatprep.subr.bf16.mxu0 %v2130_v3 }
  0x32   :  { %287 = vmatmul.mubr.bf16.gmra.mxu0 %v2030_v41 }
  0x33   :  { %294 = vmatprep.mubr.bf16.mxu0 %v2031_v42  ;;  %1790 = vmatpush3.bf16.msra.mxu0 %v2356_v43 }
  0x34   :  { %1791 = vmatprep.subr.bf16.mxu0 %v2130_v3 }
  0x37   :  { %1792 = vmatpush3.bf16.msra.mxu0 %v2376_v48 }
  0x38   :  { %1793 = vmatprep.subr.bf16.mxu0 %v2130_v3 }
  0x3a   :  { %295 = vmatmul.mubr.bf16.gmra.mxu0 %v2033_v44 }
  0x3b   :  { %302 = vmatprep.mubr.bf16.mxu0 %v2034_v45  ;;  %1794 = vmatpush3.bf16.msra.mxu0 %v2387_v50 }
  0x3c   :  { %1795 = vmatprep.subr.bf16.mxu0 %v2130_v3 }
  0x3f   :  { %1796 = vmatpush3.bf16.msra.mxu0 %v2398_v52 }
  0x40   :  { %1821 = vmatprep.subr.bf16.mxu0 %v2130_v3 }
  0x42   :  { %303 = vmatmul.mubr.bf16.gmra.mxu0 %v2036_v46 }
  0x43   :  { %1797 = vmatprep.mubr.msk.bf16.mxu0 %vm2131_vm0, %v2130_v3 }
  0x4a   :  { %1798 = vmatmul.mubr.bf16.vlgmr.msra.gmra.mxu0 %v564_v54 }
  0x4b   :  { %1822 = vmatpush3.bf16.msra.mxu0 %v2298_v30  ;;  %1837 = vmatprep.mubr.msk.bf16.mxu0 %vm2131_vm0, %v2130_v3 }
  0x4c   :  { %1823 = vmatprep.subr.bf16.mxu0 %v2130_v3 }
  0x4f   :  { %1824 = vmatpush3.bf16.msra.mxu0 %v2310_v33 }
  0x50   :  { %1825 = vmatprep.subr.bf16.mxu0 %v2130_v3 }
  0x53   :  { %1826 = vmatpush3.bf16.msra.mxu0 %v2335_v39 }
  0x54   :  { %1827 = vmatprep.subr.bf16.mxu0 %v2130_v3 }
  0x57   :  { %1828 = vmatpush3.bf16.msra.mxu0 %v2343_v40 }
  0x58   :  { %1829 = vmatprep.subr.bf16.mxu0 %v2130_v3 }
  0x5b   :  { %1830 = vmatpush3.bf16.msra.mxu0 %v2356_v43 }
  0x5c   :  { %1831 = vmatprep.subr.bf16.mxu0 %v2130_v3 }
  0x5f   :  { %1832 = vmatpush3.bf16.msra.mxu0 %v2376_v48 }
  0x60   :  { %1833 = vmatprep.subr.bf16.mxu0 %v2130_v3 }
  0x63   :  { %1834 = vmatpush3.bf16.msra.mxu0 %v2387_v50 }
  0x64   :  { %1835 = vmatprep.subr.bf16.mxu0 %v2130_v3 }
  0x67   :  { %1836 = vmatpush3.bf16.msra.mxu0 %v2398_v52 }
  0x68   :  { %1861 = vmatprep.subr.bf16.mxu0 %v2130_v3 }
  0x81   :  { %v334_v2 = vpop.permute.xlu1 %333 }
  0x82   :  { %v324_v57 = vpop.permute.xlu0 %323 }
  0x85   :  { %v339_v16 = vpop.permute.xlu1 %338 }
  0x86   :  { %v329_v4 = vpop.permute.xlu0 %328 }
  0x89   :  { %v349_v32 = vpop.permute.xlu1 %348 }
  0x8a   :  { %v344_v26 = vpop.permute.xlu0 %343 }
  0x8d   :  { %v359_v54 = vpop.permute.xlu1 %358 }
  0x8e   :  { %v354_v45 = vpop.permute.xlu0 %353 }
  0xe2   :  { %v1603_v56 = vpop.f32.mrf.mxu0 }
  0xe4   :  { %v1604_v58 = vpop.f32.mrf.mxu0 }
  0xe5   :  { %v1605_v59 = vadd.f32 %v1604_v58, %v1603_v56 }
  0xe6   :  { %v1606_v60 = vpop.f32.mrf.mxu0 }
  0xe7   :  { %v371_v61 = vmul.f32 %v1605_v59, %v324_v57 }
  0xe8   :  { %v1607_v63 = vpop.f32.mrf.mxu0 }
  0xe9   :  { %v1608_v0 = vadd.f32 %v1607_v63, %v1606_v60  ;;  %v388_v6 = vadd.f32 %v2435_v62, %v371_v61 }
  0xea   :  { %v1609_v5 = vpop.f32.mrf.mxu0 }
  0xeb   :  { %v372_v7 = vmul.f32 %v1608_v0, %v329_v4  ;;  %v398_v12 = vmax.f32 %v388_v6, 0.0  ;;  %v364_v0 = vpop.permute.xlu0 %363 }
  0xec   :  { %v1610_v8 = vpop.f32.mrf.mxu0 }
  0xed   :  { %v389_v9 = vadd.f32 %v2435_v62, %v372_v7  ;;  %v1611_v10 = vadd.f32 %v1610_v8, %v1609_v5  ;;  %v369_v8 = vpop.permute.xlu1 %368 }
  0xee   :  { %v1612_v11 = vpop.f32.mrf.mxu0 }
  0xef   :  { %v399_v13 = vmax.f32 %v389_v9, 0.0  ;;  %v373_v14 = vmul.f32 %v1611_v10, %v334_v2 }
  0xf0   :  { %v1613_v15 = vpop.f32.mrf.mxu0 }
  0xf1   :  { %v390_v17 = vadd.f32 %v2435_v62, %v373_v14  ;;  %v1614_v18 = vadd.f32 %v1613_v15, %v1612_v11  ;;  %v408_v19 = vpack.c.bf16 %v399_v13, %v398_v12 }
  0xf2   :  { %v1615_v20 = vpop.f32.mrf.mxu0 }
  0xf3   :  { %v374_v21 = vmul.f32 %v1614_v18, %v339_v16  ;;  %1762 = vmatmul.mubr.bf16.vlgmr.msra.gmra.mxu1 %v408_v19  ;;  %v400_v23 = vmax.f32 %v390_v17, 0.0 }
  0xf4   :  { %v1616_v22 = vpop.f32.mrf.mxu0  ;;  %1765 = vmatprep.mubr.msk.bf16.mxu1 %vm2131_vm0, %v2130_v3  ;;  %1802 = vmatpush3.bf16.msra.mxu1 %v2298_v30 }
  0xf5   :  { %v391_v24 = vadd.f32 %v2435_v62, %v374_v21  ;;  %v1617_v25 = vadd.f32 %v1616_v22, %v1615_v20  ;;  %1803 = vmatprep.subr.bf16.mxu1 %v2130_v3 }
  0xf6   :  { %v1618_v27 = vpop.f32.mrf.mxu0 }
  0xf7   :  { %v401_v28 = vmax.f32 %v391_v24, 0.0  ;;  %v375_v29 = vmul.f32 %v1617_v25, %v344_v26 }
  0xf8   :  { %v1619_v31 = vpop.f32.mrf.mxu0  ;;  %1804 = vmatpush3.bf16.msra.mxu1 %v2310_v33 }
  0xf9   :  { %v1620_v34 = vadd.f32 %v1619_v31, %v1618_v27  ;;  %v409_v35 = vpack.c.bf16 %v401_v28, %v400_v23  ;;  %1805 = vmatprep.subr.bf16.mxu1 %v2130_v3  ;;  %v392_v37 = vadd.f32 %v2435_v62, %v375_v29 }
  0xfa   :  { %v1621_v36 = vpop.f32.mrf.mxu0 }
  0xfb   :  { %v376_v38 = vmul.f32 %v1620_v34, %v349_v32  ;;  %1766 = vmatmul.mubr.bf16.gmra.mxu1 %v409_v35  ;;  %v402_v47 = vmax.f32 %v392_v37, 0.0 }
  0xfc   :  { %v1622_v41 = vpop.f32.mrf.mxu0  ;;  %1769 = vmatprep.mubr.msk.bf16.mxu1 %vm2131_vm0, %v2130_v3  ;;  %1806 = vmatpush3.bf16.msra.mxu1 %v2335_v39 }
  0xfd   :  { %v393_v42 = vadd.f32 %v2435_v62, %v376_v38  ;;  %v1623_v44 = vadd.f32 %v1622_v41, %v1621_v36  ;;  %1807 = vmatprep.subr.bf16.mxu1 %v2130_v3 }
  0xfe   :  { %v1624_v46 = vpop.f32.mrf.mxu0 }
  0xff   :  { %v403_v49 = vmax.f32 %v393_v42, 0.0  ;;  %v377_v51 = vmul.f32 %v1623_v44, %v354_v45 }
 0x100   :  { %v1625_v53 = vpop.f32.mrf.mxu0  ;;  %1808 = vmatpush3.bf16.msra.mxu1 %v2343_v40 }
 0x101   :  { %v1626_v55 = vadd.f32 %v1625_v53, %v1624_v46  ;;  %v410_v56 = vpack.c.bf16 %v403_v49, %v402_v47  ;;  %1809 = vmatprep.subr.bf16.mxu1 %v2130_v3  ;;  %v394_v58 = vadd.f32 %v2435_v62, %v377_v51 }
 0x102   :  { %v1627_v57 = vpop.f32.mrf.mxu0 }
 0x103   :  { %v378_v59 = vmul.f32 %v1626_v55, %v359_v54  ;;  %1770 = vmatmul.mubr.bf16.gmra.mxu1 %v410_v56  ;;  %v404_v4 = vmax.f32 %v394_v58, 0.0 }
 0x104   :  { %v1628_v60 = vpop.f32.mrf.mxu0  ;;  %1773 = vmatprep.mubr.msk.bf16.mxu1 %vm2131_vm0, %v2130_v3  ;;  %1810 = vmatpush3.bf16.msra.mxu1 %v2356_v43 }
 0x105   :  { %v395_v61 = vadd.f32 %v2435_v62, %v378_v59  ;;  %v1629_v63 = vadd.f32 %v1628_v60, %v1627_v57  ;;  %1811 = vmatprep.subr.bf16.mxu1 %v2130_v3 }
 0x106   :  { %v1630_v2 = vpop.f32.mrf.mxu0 }
 0x107   :  { %v405_v5 = vmax.f32 %v395_v61, 0.0  ;;  %v379_v6 = vmul.f32 %v1629_v63, %v364_v0 }
 0x108   :  { %v1631_v7 = vpop.f32.mrf.mxu0  ;;  %1812 = vmatpush3.bf16.msra.mxu1 %v2376_v48 }
 0x109   :  { %v1632_v9 = vadd.f32 %v1631_v7, %v1630_v2  ;;  %v411_v10 = vpack.c.bf16 %v405_v5, %v404_v4  ;;  %1813 = vmatprep.subr.bf16.mxu1 %v2130_v3  ;;  %v396_v11 = vadd.f32 %v2435_v62, %v379_v6 }
 0x10a   :  { %v663_v17 = vpop.f32.mrf.mxu0 }
 0x10b   :  { %v380_v12 = vmul.f32 %v1632_v9, %v369_v8  ;;  %1774 = vmatmul.mubr.bf16.gmra.mxu1 %v411_v10  ;;  %v406_v14 = vmax.f32 %v396_v11, 0.0 }
 0x10c   :  { %1777 = vmatprep.mubr.msk.bf16.mxu1 %vm2131_vm0, %v2130_v3  ;;  %1814 = vmatpush3.bf16.msra.mxu1 %v2387_v50  ;;  %v1799_v18 = vpop.f32.mrf.mxu0 }
 0x10d   :  { %v397_v13 = vadd.f32 %v2435_v62, %v380_v12  ;;  %1815 = vmatprep.subr.bf16.mxu1 %v2130_v3  ;;  %v1528_v62 = vld [vmem:[%s2778_s7] ss:$0 sm:$0xff] }
 0x10e   :  { %v666_v19 = vpop.f32.mrf.mxu0 }
 0x10f   :  { %v407_v15 = vmax.f32 %v397_v13, 0.0 }
 0x110   :  { %1816 = vmatpush3.bf16.msra.mxu1 %v2398_v52  ;;  %v1800_v20 = vpop.f32.mrf.mxu0 }
 0x111   :  { %v412_v16 = vpack.c.bf16 %v407_v15, %v406_v14  ;;  %1841 = vmatprep.subr.bf16.mxu1 %v2130_v3 }
 0x113   :  { %1778 = vmatmul.mubr.bf16.gmra.mxu1 %v412_v16 }
 0x114   :  { %1817 = vmatprep.mubr.msk.bf16.mxu1 %vm2131_vm0, %v2130_v3 }
 0x1b3   :  { %v518_v21 = vpop.f32.mrf.mxu1 }
 0x1b4   :  { %v519_v22 = vadd.f32 %v1528_v62, %v518_v21 }
 0x1b5   :  { %v1763_v23 = vpop.f32.mrf.mxu1 }
 0x1b6   :  { %v664_v24 = vadd.f32 %v663_v17, %v519_v22 }
 0x1b7   :  { %v521_v25 = vpop.f32.mrf.mxu1 }
 0x1b8   :  { %2109 = vtanh.f32 %v664_v24  ;;  %v522_v26 = vadd.f32 %v1528_v62, %v521_v25 }
 0x1b9   :  { %v1764_v27 = vpop.f32.mrf.mxu1 }
 0x1bb   :  { %v526_v28 = vpop.f32.mrf.mxu1 }
 0x1bc   :  { %v2476_v29 = vadd.f32 %v1528_v62, %v526_v28 }
 0x1bd   :  { %v1767_v31 = vpop.f32.mrf.mxu1 }
 0x1bf   :  { %v529_v32 = vpop.f32.mrf.mxu1 }
 0x1c0   :  { %v2478_v34 = vadd.f32 %v1528_v62, %v529_v32 }
 0x1c1   :  { %v1768_v35 = vpop.f32.mrf.mxu1 }
 0x1c3   :  { %v534_v36 = vpop.f32.mrf.mxu1 }
 0x1c4   :  { %v2480_v37 = vadd.f32 %v1528_v62, %v534_v36 }
 0x1c5   :  { %v2110_v38 = vpop.eup %2109  ;;  %v1771_v41 = vpop.f32.mrf.mxu1 }
 0x1c6   :  { %v670_v42 = vpack.c.bf16 %v2110_v38, %v2110_v38 }
 0x1c7   :  { %v537_v44 = vpop.f32.mrf.mxu1 }
 0x1c8   :  { %v2482_v45 = vadd.f32 %v1528_v62, %v537_v44  ;;  %1818 = vmatmul.mubr.bf16.vlgmr.msra.gmra.mxu1 %v670_v42 }
 0x1c9   :  { %v1772_v46 = vpop.f32.mrf.mxu1  ;;  %1842 = vmatpush3.bf16.msra.mxu1 %v2298_v30  ;;  %1857 = vmatprep.mubr.msk.bf16.mxu1 %vm2131_vm0, %v2130_v3 }
 0x1ca   :  { %1843 = vmatprep.subr.bf16.mxu1 %v2130_v3 }
 0x1cb   :  { %v542_v47 = vpop.f32.mrf.mxu1 }
 0x1cc   :  { %v2488_v49 = vadd.f32 %v1528_v62, %v542_v47 }
 0x1cd   :  { %v1775_v51 = vpop.f32.mrf.mxu1  ;;  %1844 = vmatpush3.bf16.msra.mxu1 %v2310_v33 }
 0x1ce   :  { %1845 = vmatprep.subr.bf16.mxu1 %v2130_v3 }
 0x1cf   :  { %v545_v53 = vpop.f32.mrf.mxu1 }
 0x1d0   :  { %v2492_v54 = vadd.f32 %v1528_v62, %v545_v53 }
 0x1d1   :  { %v1776_v55 = vpop.f32.mrf.mxu1  ;;  %1846 = vmatpush3.bf16.msra.mxu1 %v2335_v39 }
 0x1d2   :  { %1847 = vmatprep.subr.bf16.mxu1 %v2130_v3 }
 0x1d3   :  { %v550_v56 = vpop.f32.mrf.mxu1 }
 0x1d4   :  { %v2496_v57 = vadd.f32 %v1528_v62, %v550_v56 }
 0x1d5   :  { %v1779_v58 = vpop.f32.mrf.mxu1  ;;  %1848 = vmatpush3.bf16.msra.mxu1 %v2343_v40 }
 0x1d6   :  { %1849 = vmatprep.subr.bf16.mxu1 %v2130_v3 }
 0x1d7   :  { %v553_v59 = vpop.f32.mrf.mxu1 }
 0x1d8   :  { %v2500_v60 = vadd.f32 %v1528_v62, %v553_v59 }
 0x1d9   :  { %v1780_v61 = vpop.f32.mrf.mxu1  ;;  %1850 = vmatpush3.bf16.msra.mxu1 %v2356_v43 }
 0x1da   :  { %1851 = vmatprep.subr.bf16.mxu1 %v2130_v3  ;;  %v2056_v61 = vld [vmem:[%s2779_s9 + $0x20] sm:$0xff]  }
 0x1dd   :  { %1852 = vmatpush3.bf16.msra.mxu1 %v2376_v48 }
 0x1de   :  { %1853 = vmatprep.subr.bf16.mxu1 %v2130_v3 }
 0x1e1   :  { %1854 = vmatpush3.bf16.msra.mxu1 %v2387_v50 }
 0x1e2   :  { %1855 = vmatprep.subr.bf16.mxu1 %v2130_v3 }
 0x1e5   :  { %1856 = vmatpush3.bf16.msra.mxu1 %v2398_v52 }
 0x1e6   :  { %1881 = vmatprep.subr.bf16.mxu1 %v2130_v3 }
 0x288   :  { %v705_v63 = vpop.f32.mrf.mxu1 }
 0x289   :  { %v706_v0 = vadd.f32 %v705_v63, %v522_v26  ;;  %v2058_v63 = vld [vmem:[%s2779_s9 + $0x10] sm:$0xff]  }
 0x28a   :  { %v1819_v2 = vpop.f32.mrf.mxu1 }
 0x28b   :  { %2111 = vtanh.f32 %v706_v0  ;;  %v2059_v0 = vld [vmem:[%s2779_s9 + $0x8] sm:$0xff]   ;;  %v2060_v2 = vld [vmem:[%s2779_s9] sm:$0xff]  }
 0x28c   :  { %v708_v4 = vpop.f32.mrf.mxu1 }
 0x28d   :  { %v2061_v4 = vld [vmem:[%s2780_s10 + $0xe0] ss:$16 sps:$4 sm:$0xff]  }
 0x28e   :  { %v1820_v5 = vpop.f32.mrf.mxu1 }
 0x28f   :  { %v2063_v5 = vld [vmem:[%s2780_s10 + $0xe4] ss:$16 sps:$4 sm:$0xff]  }
 0x298   :  { %v2112_v6 = vpop.eup %2111 }
 0x299   :  { %v712_v7 = vpack.c.bf16 %v2112_v6, %v2112_v6  ;;  %v2066_v6 = vld [vmem:[%s2780_s10 + $0xec] ss:$16 sps:$4 sm:$0xff]  }
 0x29b   :  { %1838 = vmatmul.mubr.bf16.vlgmr.msra.gmra.mxu0 %v712_v7  ;;  %v2067_v7 = vld [vmem:[%s2780_s10 + $0xc0] ss:$16 sps:$4 sm:$0xff]  }
 0x29c   :  { %1862 = vmatpush3.bf16.msra.mxu0 %v2298_v30  ;;  %1877 = vmatprep.mubr.msk.bf16.mxu0 %vm2131_vm0, %v2130_v3 }
 0x29d   :  { %1863 = vmatprep.subr.bf16.mxu0 %v2130_v3 }
 0x2a0   :  { %1864 = vmatpush3.bf16.msra.mxu0 %v2310_v33 }
 0x2a1   :  { %1865 = vmatprep.subr.bf16.mxu0 %v2130_v3 }
 0x2a4   :  { %1866 = vmatpush3.bf16.msra.mxu0 %v2335_v39 }
 0x2a5   :  { %1867 = vmatprep.subr.bf16.mxu0 %v2130_v3 }
 0x2a8   :  { %1868 = vmatpush3.bf16.msra.mxu0 %v2343_v40 }
 0x2a9   :  { %1869 = vmatprep.subr.bf16.mxu0 %v2130_v3 }
 0x2ac   :  { %1870 = vmatpush3.bf16.msra.mxu0 %v2356_v43 }
 0x2ad   :  { %1871 = vmatprep.subr.bf16.mxu0 %v2130_v3 }
 0x2b0   :  { %1872 = vmatpush3.bf16.msra.mxu0 %v2376_v48 }
 0x2b1   :  { %1873 = vmatprep.subr.bf16.mxu0 %v2130_v3 }
 0x2b4   :  { %1874 = vmatpush3.bf16.msra.mxu0 %v2387_v50 }
 0x2b5   :  { %1875 = vmatprep.subr.bf16.mxu0 %v2130_v3 }
 0x2b8   :  { %1876 = vmatpush3.bf16.msra.mxu0 %v2398_v52 }
 0x2b9   :  { %1901 = vmatprep.subr.bf16.mxu0 %v2130_v3 }
 0x35b   :  { %v747_v8 = vpop.f32.mrf.mxu0 }
 0x35c   :  { %v748_v9 = vadd.f32 %v747_v8, %v2476_v29  ;;  %v2075_v8 = vld [vmem:[%s2780_s10 + $0xa4] ss:$16 sps:$4 sm:$0xff]  }
 0x35d   :  { %v1839_v10 = vpop.f32.mrf.mxu0 }
 0x35e   :  { %2113 = vtanh.f32 %v748_v9  ;;  %v2073_v9 = vld [vmem:[%s2780_s10 + $0xa0] ss:$16 sps:$4 sm:$0xff]   ;;  %v2081_v10 = vld [vmem:[%s2780_s10 + $0x84] ss:$16 sps:$4 sm:$0xff]  }
 0x35f   :  { %v750_v11 = vpop.f32.mrf.mxu0 }
 0x360   :  { %v2079_v11 = vld [vmem:[%s2780_s10 + $0x80] ss:$16 sps:$4 sm:$0xff]  }
 0x361   :  { %v1840_v12 = vpop.f32.mrf.mxu0 }
 0x362   :  { %v2087_v12 = vld [vmem:[%s2780_s10 + $0x64] ss:$16 sps:$4 sm:$0xff]  }
 0x36b   :  { %v2114_v13 = vpop.eup %2113 }
 0x36c   :  { %v754_v14 = vpack.c.bf16 %v2114_v13, %v2114_v13  ;;  %v2085_v13 = vld [vmem:[%s2780_s10 + $0x60] ss:$16 sps:$4 sm:$0xff]  }
 0x36e   :  { %1858 = vmatmul.mubr.bf16.vlgmr.msra.gmra.mxu1 %v754_v14  ;;  %v2093_v14 = vld [vmem:[%s2780_s10 + $0x44] ss:$16 sps:$4 sm:$0xff]  }
 0x36f   :  { %1882 = vmatpush3.bf16.msra.mxu1 %v2298_v30  ;;  %1897 = vmatprep.mubr.msk.bf16.mxu1 %vm2131_vm0, %v2130_v3 }
 0x370   :  { %1883 = vmatprep.subr.bf16.mxu1 %v2130_v3 }
 0x373   :  { %1884 = vmatpush3.bf16.msra.mxu1 %v2310_v33 }
 0x374   :  { %1885 = vmatprep.subr.bf16.mxu1 %v2130_v3 }
 0x377   :  { %1886 = vmatpush3.bf16.msra.mxu1 %v2335_v39 }
 0x378   :  { %1887 = vmatprep.subr.bf16.mxu1 %v2130_v3 }
 0x37b   :  { %1888 = vmatpush3.bf16.msra.mxu1 %v2343_v40 }
 0x37c   :  { %1889 = vmatprep.subr.bf16.mxu1 %v2130_v3 }
 0x37f   :  { %1890 = vmatpush3.bf16.msra.mxu1 %v2356_v43 }
 0x380   :  { %1891 = vmatprep.subr.bf16.mxu1 %v2130_v3 }
 0x383   :  { %1892 = vmatpush3.bf16.msra.mxu1 %v2376_v48 }
 0x384   :  { %1893 = vmatprep.subr.bf16.mxu1 %v2130_v3 }
 0x387   :  { %1894 = vmatpush3.bf16.msra.mxu1 %v2387_v50 }
 0x388   :  { %1895 = vmatprep.subr.bf16.mxu1 %v2130_v3 }
 0x38b   :  { %1896 = vmatpush3.bf16.msra.mxu1 %v2398_v52 }
 0x38c   :  { %1921 = vmatprep.subr.bf16.mxu1 %v2130_v3 }
 0x42e   :  { %v789_v15 = vpop.f32.mrf.mxu1 }
 0x42f   :  { %v790_v16 = vadd.f32 %v789_v15, %v2478_v34  ;;  %v2091_v15 = vld [vmem:[%s2780_s10 + $0x40] ss:$16 sps:$4 sm:$0xff]  }
 0x430   :  { %v1859_v17 = vpop.f32.mrf.mxu1 }
 0x431   :  { %2115 = vtanh.f32 %v790_v16  ;;  %v2099_v16 = vld [vmem:[%s2780_s10 + $0x24] ss:$16 sps:$4 sm:$0xff]   ;;  %v2097_v17 = vld [vmem:[%s2780_s10 + $0x20] ss:$16 sps:$4 sm:$0xff]  }
 0x432   :  { %v792_v18 = vpop.f32.mrf.mxu1 }
 0x434   :  { %v1860_v19 = vpop.f32.mrf.mxu1 }
 0x43e   :  { %v2116_v20 = vpop.eup %2115 }
 0x43f   :  { %v796_v62 = vpack.c.bf16 %v2116_v20, %v2116_v20 }
 0x441   :  { %1878 = vmatmul.mubr.bf16.vlgmr.msra.gmra.mxu0 %v796_v62 }
 0x442   :  { %1902 = vmatpush3.bf16.msra.mxu0 %v2298_v30  ;;  %1917 = vmatprep.mubr.msk.bf16.mxu0 %vm2131_vm0, %v2130_v3 }
 0x443   :  { %1903 = vmatprep.subr.bf16.mxu0 %v2130_v3 }
 0x446   :  { %1904 = vmatpush3.bf16.msra.mxu0 %v2310_v33 }
 0x447   :  { %1905 = vmatprep.subr.bf16.mxu0 %v2130_v3 }
 0x44a   :  { %1906 = vmatpush3.bf16.msra.mxu0 %v2335_v39 }
 0x44b   :  { %1907 = vmatprep.subr.bf16.mxu0 %v2130_v3 }
 0x44e   :  { %1908 = vmatpush3.bf16.msra.mxu0 %v2343_v40 }
 0x44f   :  { %1909 = vmatprep.subr.bf16.mxu0 %v2130_v3 }
 0x452   :  { %1910 = vmatpush3.bf16.msra.mxu0 %v2356_v43 }
 0x453   :  { %1911 = vmatprep.subr.bf16.mxu0 %v2130_v3 }
 0x456   :  { %1912 = vmatpush3.bf16.msra.mxu0 %v2376_v48 }
 0x457   :  { %1913 = vmatprep.subr.bf16.mxu0 %v2130_v3 }
 0x45a   :  { %1914 = vmatpush3.bf16.msra.mxu0 %v2387_v50 }
 0x45b   :  { %1915 = vmatprep.subr.bf16.mxu0 %v2130_v3 }
 0x45e   :  { %1916 = vmatpush3.bf16.msra.mxu0 %v2398_v52 }
 0x45f   :  { %1941 = vmatprep.subr.bf16.mxu0 %v2130_v3 }
 0x501   :  { %v831_v21 = vpop.f32.mrf.mxu0 }
 0x502   :  { %v832_v22 = vadd.f32 %v831_v21, %v2480_v37 }
 0x503   :  { %v1879_v23 = vpop.f32.mrf.mxu0 }
 0x504   :  { %2117 = vtanh.f32 %v832_v22  ;;  %v2064_v23 = vld [vmem:[%s2780_s10 + $0xe8] ss:$16 sps:$4 sm:$0xff]  }
 0x505   :  { %v834_v24 = vpop.f32.mrf.mxu0 }
 0x507   :  { %v1880_v25 = vpop.f32.mrf.mxu0 }
 0x508   :  { %v2072_v25 = vld [vmem:[%s2780_s10 + $0xcc] ss:$16 sps:$4 sm:$0xff]  }
 0x511   :  { %v2118_v26 = vpop.eup %2117 }
 0x512   :  { %v838_v27 = vpack.c.bf16 %v2118_v26, %v2118_v26  ;;  %v2078_v26 = vld [vmem:[%s2780_s10 + $0xac] ss:$16 sps:$4 sm:$0xff]  }
 0x514   :  { %1898 = vmatmul.mubr.bf16.vlgmr.msra.gmra.mxu1 %v838_v27  ;;  %v2076_v27 = vld [vmem:[%s2780_s10 + $0xa8] ss:$16 sps:$4 sm:$0xff]  }
 0x515   :  { %1922 = vmatpush3.bf16.msra.mxu1 %v2298_v30  ;;  %1937 = vmatprep.mubr.msk.bf16.mxu1 %vm2131_vm0, %v2130_v3 }
 0x516   :  { %1923 = vmatprep.subr.bf16.mxu1 %v2130_v3 }
 0x519   :  { %1924 = vmatpush3.bf16.msra.mxu1 %v2310_v33 }
 0x51a   :  { %1925 = vmatprep.subr.bf16.mxu1 %v2130_v3 }
 0x51d   :  { %1926 = vmatpush3.bf16.msra.mxu1 %v2335_v39 }
 0x51e   :  { %1927 = vmatprep.subr.bf16.mxu1 %v2130_v3 }
 0x521   :  { %1928 = vmatpush3.bf16.msra.mxu1 %v2343_v40 }
 0x522   :  { %1929 = vmatprep.subr.bf16.mxu1 %v2130_v3 }
 0x525   :  { %1930 = vmatpush3.bf16.msra.mxu1 %v2356_v43 }
 0x526   :  { %1931 = vmatprep.subr.bf16.mxu1 %v2130_v3 }
 0x529   :  { %1932 = vmatpush3.bf16.msra.mxu1 %v2376_v48 }
 0x52a   :  { %1933 = vmatprep.subr.bf16.mxu1 %v2130_v3 }
 0x52d   :  { %1934 = vmatpush3.bf16.msra.mxu1 %v2387_v50 }
 0x52e   :  { %1935 = vmatprep.subr.bf16.mxu1 %v2130_v3 }
 0x531   :  { %1936 = vmatpush3.bf16.msra.mxu1 %v2398_v52 }
 0x532   :  { %1961 = vmatprep.subr.bf16.mxu1 %v2130_v3 }
 0x5d4   :  { %v873_v28 = vpop.f32.mrf.mxu1 }
 0x5d5   :  { %v874_v29 = vadd.f32 %v873_v28, %v2482_v45  ;;  %v2084_v28 = vld [vmem:[%s2780_s10 + $0x8c] ss:$16 sps:$4 sm:$0xff]  }
 0x5d6   :  { %v1899_v31 = vpop.f32.mrf.mxu1 }
 0x5d7   :  { %2119 = vtanh.f32 %v874_v29  ;;  %v2090_v29 = vld [vmem:[%s2780_s10 + $0x6c] ss:$16 sps:$4 sm:$0xff]   ;;  %v2088_v31 = vld [vmem:[%s2780_s10 + $0x68] ss:$16 sps:$4 sm:$0xff]  }
 0x5d8   :  { %v876_v32 = vpop.f32.mrf.mxu1 }
 0x5d9   :  { %v2096_v32 = vld [vmem:[%s2780_s10 + $0x4c] ss:$16 sps:$4 sm:$0xff]  }
 0x5da   :  { %v1900_v34 = vpop.f32.mrf.mxu1 }
 0x5db   :  { %v2094_v34 = vld [vmem:[%s2780_s10 + $0x48] ss:$16 sps:$4 sm:$0xff]  }
 0x5e4   :  { %v2120_v35 = vpop.eup %2119 }
 0x5e5   :  { %v880_v36 = vpack.c.bf16 %v2120_v35, %v2120_v35  ;;  %v2102_v35 = vld [vmem:[%s2780_s10 + $0x2c] ss:$16 sps:$4 sm:$0xff]  }
 0x5e7   :  { %1918 = vmatmul.mubr.bf16.vlgmr.msra.gmra.mxu0 %v880_v36  ;;  %v2100_v36 = vld [vmem:[%s2780_s10 + $0x28] ss:$16 sps:$4 sm:$0xff]  }
 0x5e8   :  { %1942 = vmatpush3.bf16.msra.mxu0 %v2298_v30  ;;  %1957 = vmatprep.mubr.msk.bf16.mxu0 %vm2131_vm0, %v2130_v3 }
 0x5e9   :  { %1943 = vmatprep.subr.bf16.mxu0 %v2130_v3 }
 0x5ec   :  { %1944 = vmatpush3.bf16.msra.mxu0 %v2310_v33 }
 0x5ed   :  { %1945 = vmatprep.subr.bf16.mxu0 %v2130_v3 }
 0x5f0   :  { %1946 = vmatpush3.bf16.msra.mxu0 %v2335_v39 }
 0x5f1   :  { %1947 = vmatprep.subr.bf16.mxu0 %v2130_v3 }
 0x5f4   :  { %1948 = vmatpush3.bf16.msra.mxu0 %v2343_v40 }
 0x5f5   :  { %1949 = vmatprep.subr.bf16.mxu0 %v2130_v3 }
 0x5f8   :  { %1950 = vmatpush3.bf16.msra.mxu0 %v2356_v43 }
 0x5f9   :  { %1951 = vmatprep.subr.bf16.mxu0 %v2130_v3 }
 0x5fc   :  { %1952 = vmatpush3.bf16.msra.mxu0 %v2376_v48 }
 0x5fd   :  { %1953 = vmatprep.subr.bf16.mxu0 %v2130_v3 }
 0x600   :  { %1954 = vmatpush3.bf16.msra.mxu0 %v2387_v50 }
 0x601   :  { %1955 = vmatprep.subr.bf16.mxu0 %v2130_v3 }
 0x604   :  { %1956 = vmatpush3.bf16.msra.mxu0 %v2398_v52 }
 0x605   :  { %1981 = vmatprep.subr.bf16.mxu0 %v2130_v3 }
 0x6a7   :  { %v915_v37 = vpop.f32.mrf.mxu0 }
 0x6a8   :  { %v916_v38 = vadd.f32 %v915_v37, %v2488_v49  ;;  %v2105_v37 = vld [vmem:[%s2780_s10 + $0x4] ss:$16 sps:$4 sm:$0xff]  }
 0x6a9   :  { %v1919_v41 = vpop.f32.mrf.mxu0 }
 0x6aa   :  { %2121 = vtanh.f32 %v916_v38  ;;  %v2108_v38 = vld [vmem:[%s2780_s10 + $0xc] ss:$16 sps:$4 sm:$0xff]   ;;  %v2103_v41 = vld [vmem:[%s2780_s10] ss:$16 sps:$4 sm:$0xff]  }
 0x6ab   :  { %v918_v42 = vpop.f32.mrf.mxu0 }
 0x6ac   :  { %v2106_v42 = vld [vmem:[%s2780_s10 + $0x8] ss:$16 sps:$4 sm:$0xff]  }
 0x6ad   :  { %v1920_v44 = vpop.f32.mrf.mxu0 }
 0x6ae   :  { %v1065_v44 = vld [vmem:[%s2781_s2] sm:$0xff] }
 0x6b7   :  { %v2122_v45 = vpop.eup %2121 }
 0x6b8   :  { %v922_v46 = vpack.c.bf16 %v2122_v45, %v2122_v45 }
 0x6ba   :  { %1938 = vmatmul.mubr.bf16.vlgmr.msra.gmra.mxu1 %v922_v46 }
 0x6bb   :  { %1962 = vmatpush3.bf16.msra.mxu1 %v2298_v30  ;;  %1977 = vmatprep.mubr.msk.bf16.mxu1 %vm2131_vm0, %v2130_v3 }
 0x6bc   :  { %1963 = vmatprep.subr.bf16.mxu1 %v2130_v3 }
 0x6bf   :  { %1964 = vmatpush3.bf16.msra.mxu1 %v2310_v33 }
 0x6c0   :  { %1965 = vmatprep.subr.bf16.mxu1 %v2130_v3 }
 0x6c3   :  { %1966 = vmatpush3.bf16.msra.mxu1 %v2335_v39 }
 0x6c4   :  { %1967 = vmatprep.subr.bf16.mxu1 %v2130_v3 }
 0x6c7   :  { %1968 = vmatpush3.bf16.msra.mxu1 %v2343_v40 }
 0x6c8   :  { %1969 = vmatprep.subr.bf16.mxu1 %v2130_v3 }
 0x6cb   :  { %1970 = vmatpush3.bf16.msra.mxu1 %v2356_v43 }
 0x6cc   :  { %1971 = vmatprep.subr.bf16.mxu1 %v2130_v3 }
 0x6cf   :  { %1972 = vmatpush3.bf16.msra.mxu1 %v2376_v48  ;;  %v2053_v48 = vld [vmem:[%s2779_s9 + $0x38] sm:$0xff]  }
 0x6d0   :  { %1973 = vmatprep.subr.bf16.mxu1 %v2130_v3 }
 0x6d3   :  { %1974 = vmatpush3.bf16.msra.mxu1 %v2387_v50  ;;  %v2054_v50 = vld [vmem:[%s2779_s9 + $0x30] sm:$0xff]  }
 0x6d4   :  { %1975 = vmatprep.subr.bf16.mxu1 %v2130_v3 }
 0x6d7   :  { %1976 = vmatpush3.bf16.msra.mxu1 %v2398_v52  ;;  %v2055_v52 = vld [vmem:[%s2779_s9 + $0x28] sm:$0xff]  }
 0x6d8   :  { %1370 = vmatprep.subr.bf16.mxu1 %v2063_v5 }
 0x77a   :  { %v957_v30 = vpop.f32.mrf.mxu1 }
 0x77b   :  { %v958_v33 = vadd.f32 %v957_v30, %v2492_v54 }
 0x77c   :  { %v1939_v39 = vpop.f32.mrf.mxu1 }
 0x77d   :  { %2123 = vtanh.f32 %v958_v33 }
 0x77e   :  { %v960_v40 = vpop.f32.mrf.mxu1 }
 0x780   :  { %v1940_v47 = vpop.f32.mrf.mxu1 }
 0x78a   :  { %v2124_v43 = vpop.eup %2123 }
 0x78b   :  { %v964_v49 = vpack.c.bf16 %v2124_v43, %v2124_v43  ;;  %v19_v43 = vstv %s2782_s13 }
 0x78c   :  { %20 = vst [vmem:[#allocation2] sm:$0x1] %v19_v43 }
 0x78d   :  { %1958 = vmatmul.mubr.bf16.vlgmr.msra.gmra.mxu0 %v964_v49  ;;  %v1190_v49 = vlaneseq }
 0x78e   :  { %1997 = vmatprep.mubr.msk.bf16.mxu0 %vm2131_vm0, %v2130_v3  ;;  %1982 = vmatpush3.bf16.msra.mxu0 %v2053_v48 }
 0x78f   :  { %1983 = vmatprep.subr.bf16.mxu0 %v2130_v3  ;;  %v1191_v48 = vshrl.u32 %v1190_v49, 7 }
 0x792   :  { %1984 = vmatpush3.bf16.msra.mxu0 %v2054_v50  ;;  %v1192_v50 = vsub.s32 0, %v1191_v48 }
 0x793   :  { %1985 = vmatprep.subr.bf16.mxu0 %v2130_v3 }
 0x796   :  { %1986 = vmatpush3.bf16.msra.mxu0 %v2055_v52  ;;  %v1200_v52 = vsub.s32 2, %v1191_v48 }
 0x797   :  { %1987 = vmatprep.subr.bf16.mxu0 %v2130_v3 }
 0x79a   :  { %1988 = vmatpush3.bf16.msra.mxu0 %v2056_v61 }
 0x79b   :  { %1989 = vmatprep.subr.bf16.mxu0 %v2130_v3 }
 0x84d   :  { %v999_v51 = vpop.f32.mrf.mxu0 }
 0x84e   :  { %v1000_v53 = vadd.f32 %v999_v51, %v2496_v57  ;;  %v2057_v57 = vld [vmem:[%s2779_s9 + $0x18] sm:$0xff]   ;;  %v1188_v51 = vld [vmem:[%s2783_s11] sm:$0xf] }
 0x84f   :  { %v1959_v54 = vpop.f32.mrf.mxu0  ;;  %1990 = vmatpush3.bf16.msra.mxu0 %v2057_v57 }
 0x850   :  { %2125 = vtanh.f32 %v1000_v53  ;;  %1991 = vmatprep.subr.bf16.mxu0 %v2130_v3  ;;  %v1196_v53 = vsub.s32 1, %v1191_v48  ;;  %v1204_v54 = vsub.s32 3, %v1191_v48 }
 0x851   :  { %v1002_v55 = vpop.f32.mrf.mxu0 }
 0x852   :  { %v1193_v55 = vrot.slane %v1188_v51, %v1192_v50  ;;  %v1205_v61 = vrot.slane %v1188_v51, %v1204_v54 }
 0x853   :  { %v1960_v56 = vpop.f32.mrf.mxu0  ;;  %1992 = vmatpush3.bf16.msra.mxu0 %v2058_v63 }
 0x854   :  { %1993 = vmatprep.subr.bf16.mxu0 %v2130_v3  ;;  %v1201_v56 = vrot.slane %v1188_v51, %v1200_v52 }
 0x857   :  { %1994 = vmatpush3.bf16.msra.mxu0 %v2059_v0 }
 0x858   :  { %1995 = vmatprep.subr.bf16.mxu0 %v2130_v3  ;;  %v2069_v3 = vld [vmem:[%s2780_s10 + $0xc4] ss:$16 sps:$4 sm:$0xff]  }
 0x85b   :  { %1996 = vmatpush3.bf16.msra.mxu0 %v2060_v2 }
 0x85c   :  { %1411 = vmatprep.subr.bf16.mxu0 %v2066_v6 }
 0x85d   :  { %v2126_v58 = vpop.eup %2125 }
 0x85e   :  { %v1006_v59 = vpack.c.bf16 %v2126_v58, %v2126_v58  ;;  %v1456_v58 = vld [vmem:[%s2784_s12] sm:$0xf] }
 0x860   :  { %1978 = vmatmul.mubr.bf16.vlgmr.msra.gmra.mxu1 %v1006_v59  ;;  %v1197_v59 = vrot.slane %v1188_v51, %v1196_v53 }
 0x861   :  { %1402 = vmatprep.mubr.bf16.mxu1 %v2129_v1  ;;  %1371 = vmatpush1.bf16.msra.mxu1 %v2061_v4  ;;  %v1461_v4 = vrot.slane %v1456_v58, %v1192_v50 }
 0x862   :  { %1372 = vmatprep.subr.bf16.mxu1 %v2069_v3 }
 0x865   :  { %1373 = vmatpush1.bf16.msra.mxu1 %v2067_v7 }
 0x866   :  { %1374 = vmatprep.subr.bf16.mxu1 %v2075_v8  ;;  %v1465_v8 = vrot.slane %v1456_v58, %v1196_v53 }
 0x869   :  { %1375 = vmatpush1.bf16.msra.mxu1 %v2073_v9 }
 0x86a   :  { %1376 = vmatprep.subr.bf16.mxu1 %v2081_v10 }
 0x86d   :  { %1377 = vmatpush1.bf16.msra.mxu1 %v2079_v11 }
 0x86e   :  { %1378 = vmatprep.subr.bf16.mxu1 %v2087_v12 }
 0x871   :  { %1379 = vmatpush1.bf16.msra.mxu1 %v2085_v13  ;;  %v1469_v13 = vrot.slane %v1456_v58, %v1200_v52 }
 0x872   :  { %1380 = vmatprep.subr.bf16.mxu1 %v2093_v14 }
 0x875   :  { %1381 = vmatpush1.bf16.msra.mxu1 %v2091_v15 }
 0x876   :  { %1382 = vmatprep.subr.bf16.mxu1 %v2099_v16 }
 0x879   :  { %1383 = vmatpush1.bf16.msra.mxu1 %v2097_v17 }
 0x87a   :  { %1384 = vmatprep.subr.bf16.mxu1 %v2105_v37 }
 0x87d   :  { %1385 = vmatpush1.bf16.msra.mxu1 %v2103_v41 }
 0x920   :  { %v1041_v18 = vpop.f32.mrf.mxu1 }
 0x921   :  { %v1042_v19 = vadd.f32 %v1041_v18, %v2500_v60  ;;  %v2070_v60 = vld [vmem:[%s2780_s10 + $0xc8] ss:$16 sps:$4 sm:$0xff]  }
 0x922   :  { %v1979_v20 = vpop.f32.mrf.mxu1 }
 0x923   :  { %2127 = vtanh.f32 %v1042_v19  ;;  %v1473_v20 = vrot.slane %v1456_v58, %v1204_v54 }
 0x924   :  { %v1044_v62 = vpop.f32.mrf.mxu1 }
 0x926   :  { %v1980_v21 = vpop.f32.mrf.mxu1 }
 0x930   :  { %v2128_v22 = vpop.eup %2127 }
 0x931   :  { %v1048_v24 = vpack.c.bf16 %v2128_v22, %v2128_v22 }
 0x933   :  { %1998 = vmatmul.mubr.bf16.vlgmr.msra.gmra.mxu0 %v1048_v24 }
 0x934   :  { %1412 = vmatpush1.bf16.msra.mxu0 %v2064_v23  ;;  %1443 = vmatprep.mubr.bf16.mxu0 %v2129_v1  ;;  %v2082_v1 = vld [vmem:[%s2780_s10 + $0x88] ss:$16 sps:$4 sm:$0xff]  }
 0x935   :  { %1413 = vmatprep.subr.bf16.mxu0 %v2072_v25  ;;  %v1586_v25 = vld [vmem:[#allocation2] ss:$0 sm:$0xff] }
 0x938   :  { %1414 = vmatpush1.bf16.msra.mxu0 %v2070_v60 }
 0x939   :  { %1415 = vmatprep.subr.bf16.mxu0 %v2078_v26 }
 0x93c   :  { %1416 = vmatpush1.bf16.msra.mxu0 %v2076_v27 }
 0x93d   :  { %1417 = vmatprep.subr.bf16.mxu0 %v2084_v28 }
 0x940   :  { %1418 = vmatpush1.bf16.msra.mxu0 %v2082_v1 }
 0x941   :  { %1419 = vmatprep.subr.bf16.mxu0 %v2090_v29 }
 0x944   :  { %1420 = vmatpush1.bf16.msra.mxu0 %v2088_v31 }
 0x945   :  { %1421 = vmatprep.subr.bf16.mxu0 %v2096_v32 }
 0x948   :  { %1422 = vmatpush1.bf16.msra.mxu0 %v2094_v34 }
 0x949   :  { %1423 = vmatprep.subr.bf16.mxu0 %v2102_v35 }
 0x94c   :  { %1424 = vmatpush1.bf16.msra.mxu0 %v2100_v36 }
 0x94d   :  { %1425 = vmatprep.subr.bf16.mxu0 %v2108_v38 }
 0x950   :  { %1426 = vmatpush1.bf16.msra.mxu0 %v2106_v42 }
 0x9f3   :  { %v1148_v45 = vpop.f32.mrf.mxu0 }
 0x9f4   :  { %v1149_v46 = vadd.f32 %v1148_v45, %v1065_v44 }
 0x9f5   :  { %v1999_v30 = vpop.f32.mrf.mxu0 }
 0x9f6   :  { %v1154_v33 = vmax.f32 %v1149_v46, 0.0 }
 0x9f7   :  { %v1151_v39 = vpop.f32.mrf.mxu0 }
 0x9f8   :  { %v1155_v40 = vpack.c.bf16 %v1154_v33, %v1154_v33 }
 0x9f9   :  { %v2000_v47 = vpop.f32.mrf.mxu0 }
 0x9fa   :  { %1403 = vmatmul.mubr.bf16.vlgmr.msra.gmra.mxu1 %v1155_v40  ;;  %1444 = vmatmul.mubr.bf16.vlgmr.msra.gmra.mxu0 %v1155_v40 }
 0xaba   :  { %v1404_v57 = vpop.f32.mrf.mxu1  ;;  %v1445_v63 = vpop.f32.mrf.mxu0 }
 0xabb   :  { %v1405_v0 = vadd.f32 %v1404_v57, %v1193_v55  ;;  %v1446_v2 = vadd.f32 %v1445_v63, %v1201_v56 }
 0xabc   :  { %v1406_v5 = vpop.f32.mrf.mxu1  ;;  %v1447_v6 = vpop.f32.mrf.mxu0 }
 0xabd   :  { %v1452_v3 = vmax.f32 %v1405_v0, 0.0  ;;  %v1407_v7 = vadd.f32 %v1406_v5, %v1197_v59  ;;  %v1448_v9 = vadd.f32 %v1447_v6, %v1205_v61  ;;  %v1454_v12 = vmax.f32 %v1446_v2, 0.0 }
 0xabe   :  { %v1408_v10 = vpop.f32.mrf.mxu1  ;;  %v1449_v11 = vpop.f32.mrf.mxu0 }
 0xabf   :  { %v1453_v14 = vmax.f32 %v1407_v7, 0.0  ;;  %v1478_v17 = vmul.f32 %v1461_v4, %v1452_v3  ;;  %v1455_v19 = vmax.f32 %v1448_v9, 0.0  ;;  %v1480_v62 = vmul.f32 %v1469_v13, %v1454_v12 }
 0xac0   :  { %v1409_v15 = vpop.f32.mrf.mxu1  ;;  %v1450_v16 = vpop.f32.mrf.mxu0 }
 0xac1   :  { %v1479_v18 = vmul.f32 %v1465_v8, %v1453_v14  ;;  %v1481_v22 = vmul.f32 %v1473_v20, %v1455_v19 }
 0xac3   :  { %v1482_v21 = vadd.f32 %v1479_v18, %v1478_v17 }
 0xac5   :  { %v1483_v23 = vadd.f32 %v1482_v21, %v1480_v62 }
 0xac7   :  { %v1484_v24 = vadd.f32 %v1483_v23, %v1481_v22 }
 0xac9   :  { %1485 = vadd.xlane.f32.xlu0 %v1484_v24 }
 0xb52   :  { %v1486_v60 = vpop.xlane.xlu0 %1485 }
 0xb53   :  { %v1494_v26 = vadd.f32 %v1586_v25, %v1486_v60 }
 0xb55   :  { %1496 = vst.msk [vmem:[%s2785_s14] sm:$0xff] %vm1495_vm1, %v1494_v26 }

</bundles_post_ra>
